<compile_context>
chip_gen: v7x
topology: tpu7x:2x2x1
jax: 0.10.0
libtpu: 0.0.40
codegen_flags: <defaults>
</compile_context>

<pallas_src>
import math
import functools

import jax
import jax.numpy as jnp
from jax.experimental import pallas as pl
from jax.experimental.pallas import tpu as pltpu


WEIGHT_KEYS = ("ln1_w", "ln1_b",
               "wq", "wk", "wv",
               "bq", "bk", "bv",
               "wo", "bo",
               "ln2_w", "ln2_b",
               "wfc", "bfc",
               "wproj", "bproj")


def _layer_norm(x, w, b, eps=1e-5):
    # x, w, b are float32; matches torch LayerNorm (biased variance, eps inside rsqrt).
    mu = jnp.mean(x, axis=-1, keepdims=True)
    var = jnp.mean(jnp.square(x - mu), axis=-1, keepdims=True)
    return (x - mu) * jax.lax.rsqrt(var + eps) * w + b


def _quick_gelu(x):
    return x * jax.nn.sigmoid(1.702 * x)


def _transformer_kernel(x_ref,
                        ln1_w_ref, ln1_b_ref,
                        wq_ref, wk_ref, wv_ref,
                        bq_ref, bk_ref, bv_ref,
                        wo_ref, bo_ref,
                        ln2_w_ref, ln2_b_ref,
                        wfc_ref, bfc_ref,
                        wproj_ref, bproj_ref,
                        o_ref, *, n_head):
    """One grid step = one (batch element, layer).  The output block index is constant
    along the layer axis, so o_ref stays VMEM-resident and carries x between layers."""
    layer = pl.program_id(1)
    bf16 = jnp.bfloat16

    # At the first layer of each batch element, seed the resident state from the input.
    @pl.when(layer == 0)
    def _():
        o_ref[...] = x_ref[...]

    x = o_ref[0].astype(jnp.float32)                    # (S, D) f32
    S, D = x.shape
    H = n_head

    # ---------------- attention branch: x + out_proj(MHA(LN1(x))) ----------------
    h1 = _layer_norm(x, ln1_w_ref[0], ln1_b_ref[0])     # (S, D) f32
    hb = jnp.broadcast_to(h1.astype(bf16)[None], (H, S, D))   # (H, S, D) bf16

    # Per-head projections (head-batched MXU matmuls). Scale is pre-folded into wq/bq.
    q = jnp.einsum("hsd,hdf->hsf", hb, wq_ref[0],
                   preferred_element_type=jnp.float32) + bq_ref[0]   # (H, S, hd)
    k = jnp.einsum("hsd,hdf->hsf", hb, wk_ref[0],
                   preferred_element_type=jnp.float32) + bk_ref[0]
    v = jnp.einsum("hsd,hdf->hsf", hb, wv_ref[0],
                   preferred_element_type=jnp.float32) + bv_ref[0]

    # attn_mask is None for this Transformer instantiation.
    s = jnp.einsum("hqf,hkf->hqk", q.astype(bf16), k.astype(bf16),
                   preferred_element_type=jnp.float32)               # (H, S, S) f32
    s = s - jnp.max(s, axis=-1, keepdims=True)                       # numerically stable
    probs = jnp.exp(s)
    probs = probs * pl.reciprocal(jnp.sum(probs, axis=-1, keepdims=True), approx=True)

    ctx = jnp.einsum("hqk,hkf->hqf", probs.astype(bf16), v.astype(bf16),
                     preferred_element_type=jnp.float32)             # (H, S, hd)

    # Out-projection applied per head, summed over heads — no lane concat needed.
    proj = jnp.einsum("hqf,hfd->hqd", ctx.astype(bf16), wo_ref[0],
                      preferred_element_type=jnp.float32)            # (H, S, D)
    attn_out = jnp.sum(proj, axis=0) + bo_ref[0]                     # (S, D)

    x = x + attn_out

    # ---------------- MLP branch: x + c_proj(QuickGELU(c_fc(LN2(x)))) ----------------
    h2 = _layer_norm(x, ln2_w_ref[0], ln2_b_ref[0])
    hid = jnp.dot(h2.astype(bf16), wfc_ref[0],
                  preferred_element_type=jnp.float32) + bfc_ref[0]   # (S, 4D)
    hid = _quick_gelu(hid)
    mlp = jnp.dot(hid.astype(bf16), wproj_ref[0],
                  preferred_element_type=jnp.float32) + bproj_ref[0]

    o_ref[0] = (x + mlp).astype(o_ref.dtype)


def prepare_weight_stacks(layer_params, n_head, w_dtype=jnp.bfloat16):
    """Host-side weight preparation: transpose, per-head split, scale folding, bf16 cast,
    and stacking across layers along a leading (L, ...) axis."""
    per_layer = []
    for p in layer_params:
        D = p["ln1_w"].shape[0]
        hd = D // n_head
        scale = 1.0 / math.sqrt(hd)

        def split_heads(w):  # (D, D_in) -> (H, D_in, hd): w_heads[h] = w[h*hd:(h+1)*hd].T
            return w.reshape(n_head, hd, D).transpose(0, 2, 1)

        wqkv, bqkv = p["wqkv"], p["bqkv"]
        entry = dict(
            ln1_w=p["ln1_w"].reshape(1, D).astype(jnp.float32),
            ln1_b=p["ln1_b"].reshape(1, D).astype(jnp.float32),
            wq=(split_heads(wqkv[:D]) * scale).astype(w_dtype),
            wk=split_heads(wqkv[D:2 * D]).astype(w_dtype),
            wv=split_heads(wqkv[2 * D:]).astype(w_dtype),
            bq=(bqkv[:D].reshape(n_head, 1, hd) * scale).astype(jnp.float32),
            bk=bqkv[D:2 * D].reshape(n_head, 1, hd).astype(jnp.float32),
            bv=bqkv[2 * D:].reshape(n_head, 1, hd).astype(jnp.float32),
            wo=p["wo"].T.reshape(n_head, hd, D).astype(w_dtype),      # per-head rows of wo.T
            bo=p["bo"].reshape(1, D).astype(jnp.float32),
            ln2_w=p["ln2_w"].reshape(1, D).astype(jnp.float32),
            ln2_b=p["ln2_b"].reshape(1, D).astype(jnp.float32),
            wfc=p["wfc"].T.astype(w_dtype),                           # (D, 4D)
            bfc=p["bfc"].reshape(1, 4 * D).astype(jnp.float32),
            wproj=p["wproj"].T.astype(w_dtype),                       # (4D, D)
            bproj=p["bproj"].reshape(1, D).astype(jnp.float32),
        )
        per_layer.append(entry)
    return {k: jnp.stack([e[k] for e in per_layer], axis=0) for k in WEIGHT_KEYS}


def transformer_forward(x, layer_params, n_head, *, w_dtype=jnp.bfloat16):
    """Equivalent of Transformer.forward; x layout (B, S, D)."""
    B, S, D = x.shape
    L = len(layer_params)
    stacks = prepare_weight_stacks(layer_params, n_head, w_dtype)
    weights = [stacks[k] for k in WEIGHT_KEYS]

    def w_spec(arr):
        nd = arr.ndim
        block = (1,) + arr.shape[1:]           # one layer's slice; trailing dims are full
        return pl.BlockSpec(block, lambda b, l, _nd=nd: (l,) + (0,) * (_nd - 1))

    in_specs = [pl.BlockSpec((1, S, D), lambda b, l: (b, 0, 0))]      # fetched once per b
    in_specs += [w_spec(w) for w in weights]
    out_spec = pl.BlockSpec((1, S, D), lambda b, l: (b, 0, 0))        # revisited across l

    # Explicit VMEM budget: double-buffered per-layer weights + x/out blocks + activations.
    per_layer_w = sum(int(w.size) * w.dtype.itemsize for w in weights) // L
    io_bytes = 2 * S * D * x.dtype.itemsize
    act_bytes = 4 * (2 * n_head * S * S + 3 * n_head * S * (D // n_head) + 24 * S * D)
    vmem_limit = int(min(max(2 * (per_layer_w + io_bytes) + act_bytes, 32 << 20), 64 << 20))
    # NOTE: v5e/v6e have 128 MiB physical VMEM (cap could be raised there); on v7x (64 MiB)
    # very large widths would want Buffered(1) weight specs or blocking wfc/wproj over 4D.

    kernel = functools.partial(_transformer_kernel, n_head=n_head)
    return pl.pallas_call(
        kernel,
        out_shape=jax.ShapeDtypeStruct((B, S, D), x.dtype),
        grid=(B, L),
        in_specs=in_specs,
        out_specs=out_spec,
        compiler_params=pltpu.CompilerParams(
            dimension_semantics=("parallel", "arbitrary"),
            vmem_limit_bytes=vmem_limit),
    )(x, *weights)


# ---------------- pure-JAX fp32 reference (for correctness check) ----------------
def _ref_block(x, p, n_head):
    B, S, D = x.shape
    hd = D // n_head
    h = _layer_norm(x, p["ln1_w"], p["ln1_b"])
    qkv = jnp.einsum("bsd,ed->bse", h, p["wqkv"]) + p["bqkv"]
    q, k, v = qkv[..., :D], qkv[..., D:2 * D], qkv[..., 2 * D:]
    q = q.reshape(B, S, n_head, hd).transpose(0, 2, 1, 3) / math.sqrt(hd)
    k = k.reshape(B, S, n_head, hd).transpose(0, 2, 1, 3)
    v = v.reshape(B, S, n_head, hd).transpose(0, 2, 1, 3)
    s = jnp.einsum("bhqd,bhkd->bhqk", q, k)
    p_attn = jax.nn.softmax(s, axis=-1)
    o = jnp.einsum("bhqk,bhkd->bhqd", p_attn, v)
    o = o.transpose(0, 2, 1, 3).reshape(B, S, D)
    o = jnp.einsum("bsd,ed->bse", o, p["wo"]) + p["bo"]
    x = x + o
    h2 = _layer_norm(x, p["ln2_w"], p["ln2_b"])
    hid = _quick_gelu(jnp.einsum("bsd,ed->bse", h2, p["wfc"]) + p["bfc"])
    mlp = jnp.einsum("bse,de->bsd", hid, p["wproj"]) + p["bproj"]
    return x + mlp


def _ref_transformer(x, layer_params, n_head):
    for p in layer_params:
        x = _ref_block(x, p, n_head)
    return x


def init_params(key, width, layers):
    """Deterministic synthetic parameters with the same shapes as the torch module."""
    D = width
    layer_params = []
    for li in range(layers):
        ks = jax.random.split(jax.random.fold_in(key, li), 6)
        p = {
            "ln1_w": jnp.ones((D,), jnp.float32),
            "ln1_b": jnp.zeros((D,), jnp.float32),
            # nn.MultiheadAttention: in_proj_weight (3D, D), in_proj_bias (3D,)
            "wqkv": 0.05 * jax.random.normal(ks[0], (3 * D, D), jnp.float32),
            "bqkv": 0.01 * jax.random.normal(ks[1], (3 * D,), jnp.float32),
            # out_proj: (D, D)
            "wo": 0.05 * jax.random.normal(ks[2], (D, D), jnp.float32),
            "bo": jnp.zeros((D,), jnp.float32),
            "ln2_w": jnp.ones((D,), jnp.float32),
            "ln2_b": jnp.zeros((D,), jnp.float32),
            # mlp c_fc: (4D, D), c_proj: (D, 4D)
            "wfc": 0.05 * jax.random.normal(ks[3], (4 * D, D), jnp.float32),
            "bfc": 0.01 * jax.random.normal(ks[4], (4 * D,), jnp.float32),
            "wproj": 0.05 * jax.random.normal(ks[5], (D, 4 * D), jnp.float32),
            "bproj": jnp.zeros((D,), jnp.float32),
        }
        layer_params.append(p)
    return layer_params


if __name__ == "__main__":
    # small shapes consistent with the module: width (d_model), heads, layers; seq & batch free
    batch, seq, width, heads, layers = 2, 8, 32, 4, 2

    key = jax.random.PRNGKey(0)
    xkey, pkey = jax.random.split(key)
    x = jax.random.normal(xkey, (batch, seq, width), jnp.float32)  # layout: (B, S, D)
    params = init_params(pkey, width, layers)

    out = transformer_forward(x, params, heads)
    out = jax.block_until_ready(out)

    ref = _ref_transformer(x, params, heads)
    assert out.shape == (batch, seq, width)
    # bf16 matmuls (f32 accumulation) + approx reciprocal vs fp32 reference -> loose tolerance.
    assert jnp.allclose(out, ref, atol=5e-2, rtol=5e-2), "mismatch vs JAX reference"

    print("KERNEL_OK")
</pallas_src>

<mosaic_0001>
module attributes {stable_mosaic.version = 11 : i64} {
  func.func @_transformer_kernel(%arg0: i32, %arg1: i32, %arg2: memref<1x8x32xf32, #tpu.memory_space<vmem>>, %arg3: memref<1x1x32xf32, #tpu.memory_space<vmem>>, %arg4: memref<1x1x32xf32, #tpu.memory_space<vmem>>, %arg5: memref<1x4x32x8xbf16, #tpu.memory_space<vmem>>, %arg6: memref<1x4x32x8xbf16, #tpu.memory_space<vmem>>, %arg7: memref<1x4x32x8xbf16, #tpu.memory_space<vmem>>, %arg8: memref<1x4x1x8xf32, #tpu.memory_space<vmem>>, %arg9: memref<1x4x1x8xf32, #tpu.memory_space<vmem>>, %arg10: memref<1x4x1x8xf32, #tpu.memory_space<vmem>>, %arg11: memref<1x4x8x32xbf16, #tpu.memory_space<vmem>>, %arg12: memref<1x1x32xf32, #tpu.memory_space<vmem>>, %arg13: memref<1x1x32xf32, #tpu.memory_space<vmem>>, %arg14: memref<1x1x32xf32, #tpu.memory_space<vmem>>, %arg15: memref<1x32x128xbf16, #tpu.memory_space<vmem>>, %arg16: memref<1x1x128xf32, #tpu.memory_space<vmem>>, %arg17: memref<1x128x32xbf16, #tpu.memory_space<vmem>>, %arg18: memref<1x1x32xf32, #tpu.memory_space<vmem>>, %arg19: memref<1x8x32xf32, #tpu.memory_space<vmem>>) attributes {dimension_semantics = [#tpu.dimension_semantics<parallel>, #tpu.dimension_semantics<arbitrary>], iteration_bounds = array<i64: 2, 2>, scalar_prefetch = 0 : i64, scratch_operands = 0 : i64, tpu.core_type = #tpu.core_type<tc>, window_params = [{transform_indices = @transform_0, window_bounds = array<i64: 1, 8, 32>}, {transform_indices = @transform_1, window_bounds = array<i64: 1, 1, 32>}, {transform_indices = @transform_2, window_bounds = array<i64: 1, 1, 32>}, {transform_indices = @transform_3, window_bounds = array<i64: 1, 4, 32, 8>}, {transform_indices = @transform_4, window_bounds = array<i64: 1, 4, 32, 8>}, {transform_indices = @transform_5, window_bounds = array<i64: 1, 4, 32, 8>}, {transform_indices = @transform_6, window_bounds = array<i64: 1, 4, 1, 8>}, {transform_indices = @transform_7, window_bounds = array<i64: 1, 4, 1, 8>}, {transform_indices = @transform_8, window_bounds = array<i64: 1, 4, 1, 8>}, {transform_indices = @transform_9, window_bounds = array<i64: 1, 4, 8, 32>}, {transform_indices = @transform_10, window_bounds = array<i64: 1, 1, 32>}, {transform_indices = @transform_11, window_bounds = array<i64: 1, 1, 32>}, {transform_indices = @transform_12, window_bounds = array<i64: 1, 1, 32>}, {transform_indices = @transform_13, window_bounds = array<i64: 1, 32, 128>}, {transform_indices = @transform_14, window_bounds = array<i64: 1, 1, 128>}, {transform_indices = @transform_15, window_bounds = array<i64: 1, 128, 32>}, {transform_indices = @transform_16, window_bounds = array<i64: 1, 1, 32>}, {transform_indices = @transform_17, window_bounds = array<i64: 1, 8, 32>}]} {
    %c0_i32 = arith.constant 0 : i32
    %0 = arith.cmpi eq, %arg1, %c0_i32 : i32
    %1 = arith.extui %0 : i1 to i32
    %c0_i32_0 = arith.constant 0 : i32
    %2 = arith.cmpi ne, %1, %c0_i32_0 : i32
    scf.if %2 {
      %c0_83 = arith.constant 0 : index
      %c0_84 = arith.constant 0 : index
      %c0_85 = arith.constant 0 : index
      %136 = vector.load %arg2[%c0_83, %c0_84, %c0_85] : memref<1x8x32xf32, #tpu.memory_space<vmem>>, vector<1x8x32xf32>
      %c0_86 = arith.constant 0 : index
      %c0_87 = arith.constant 0 : index
      %c0_88 = arith.constant 0 : index
      %137 = vector.load %arg19[%c0_86, %c0_87, %c0_88] : memref<1x8x32xf32, #tpu.memory_space<vmem>>, vector<1x8x32xf32>
      tpu.vector_store %arg19[%c0_86, %c0_87, %c0_88], %136 {strides = array<i32>} : memref<1x8x32xf32, #tpu.memory_space<vmem>>, vector<1x8x32xf32>,
    } else {
    }
    %c0 = arith.constant 0 : index
    %c0_1 = arith.constant 0 : index
    %c0_2 = arith.constant 0 : index
    %3 = vector.load %arg19[%c0, %c0_1, %c0_2] : memref<1x8x32xf32, #tpu.memory_space<vmem>>, vector<1x8x32xf32>
    %4 = vector.shape_cast %3 : vector<1x8x32xf32> to vector<8x32xf32>
    %c0_3 = arith.constant 0 : index
    %c0_4 = arith.constant 0 : index
    %c0_5 = arith.constant 0 : index
    %5 = vector.load %arg3[%c0_3, %c0_4, %c0_5] : memref<1x1x32xf32, #tpu.memory_space<vmem>>, vector<1x1x32xf32>
    %6 = vector.shape_cast %5 : vector<1x1x32xf32> to vector<1x32xf32>
    %c0_6 = arith.constant 0 : index
    %c0_7 = arith.constant 0 : index
    %c0_8 = arith.constant 0 : index
    %7 = vector.load %arg4[%c0_6, %c0_7, %c0_8] : memref<1x1x32xf32, #tpu.memory_space<vmem>>, vector<1x1x32xf32>
    %8 = vector.shape_cast %7 : vector<1x1x32xf32> to vector<1x32xf32>
    %cst = arith.constant dense<0.000000e+00> : vector<8xf32>
    %9 = vector.multi_reduction <add>, %4, %cst [1] : vector<8x32xf32> to vector<8xf32>
    %10 = vector.shape_cast %9 : vector<8xf32> to vector<8x1xf32>
    %cst_9 = arith.constant 3.200000e+01 : f32
    %11 = vector.broadcast %cst_9 : f32 to vector<8x1xf32>
    %12 = arith.divf %10, %11 : vector<8x1xf32>
    %13 = vector.broadcast %12 : vector<8x1xf32> to vector<8x32xf32>
    %14 = arith.subf %4, %13 : vector<8x32xf32>
    %15 = arith.mulf %14, %14 : vector<8x32xf32>
    %cst_10 = arith.constant dense<0.000000e+00> : vector<8xf32>
    %16 = vector.multi_reduction <add>, %15, %cst_10 [1] : vector<8x32xf32> to vector<8xf32>
    %17 = vector.shape_cast %16 : vector<8xf32> to vector<8x1xf32>
    %cst_11 = arith.constant 3.200000e+01 : f32
    %18 = vector.broadcast %cst_11 : f32 to vector<8x1xf32>
    %19 = arith.divf %17, %18 : vector<8x1xf32>
    %20 = vector.broadcast %12 : vector<8x1xf32> to vector<8x32xf32>
    %21 = arith.subf %4, %20 : vector<8x32xf32>
    %cst_12 = arith.constant 9.99999974E-6 : f32
    %22 = vector.broadcast %cst_12 : f32 to vector<8x1xf32>
    %23 = arith.addf %19, %22 : vector<8x1xf32>
    %24 = math.rsqrt %23 : vector<8x1xf32>
    %25 = vector.broadcast %24 : vector<8x1xf32> to vector<8x32xf32>
    %26 = arith.mulf %21, %25 : vector<8x32xf32>
    %27 = vector.broadcast %6 : vector<1x32xf32> to vector<8x32xf32>
    %28 = arith.mulf %26, %27 : vector<8x32xf32>
    %29 = vector.broadcast %8 : vector<1x32xf32> to vector<8x32xf32>
    %30 = arith.addf %28, %29 : vector<8x32xf32>
    %31 = arith.truncf %30 : vector<8x32xf32> to vector<8x32xbf16>
    %32 = vector.shape_cast %31 : vector<8x32xbf16> to vector<1x8x32xbf16>
    %33 = vector.shape_cast %32 : vector<1x8x32xbf16> to vector<1x8x32xbf16>
    %34 = vector.broadcast %33 : vector<1x8x32xbf16> to vector<4x8x32xbf16>
    %c0_13 = arith.constant 0 : index
    %c0_14 = arith.constant 0 : index
    %c0_15 = arith.constant 0 : index
    %c0_16 = arith.constant 0 : index
    %35 = vector.load %arg5[%c0_13, %c0_14, %c0_15, %c0_16] : memref<1x4x32x8xbf16, #tpu.memory_space<vmem>>, vector<1x4x32x8xbf16>
    %36 = vector.shape_cast %35 : vector<1x4x32x8xbf16> to vector<4x32x8xbf16>
    "tpu.trace_start"() <{level = 10 : i32, message = "hsd,hdf->hsf"}> : () -> ()
    %cst_17 = arith.constant dense<0.000000e+00> : vector<4x8x8xf32>
    %37 = tpu.matmul %34, %36, %cst_17 {dimension_numbers = #tpu.dot_dimension_numbers<[2], [1], [1], [2], [0, 0, 0, 1, 1, 2], [0], [0]>} : vector<4x8x32xbf16>, vector<4x32x8xbf16>, vector<4x8x8xf32> -> vector<4x8x8xf32>
    "tpu.trace_stop"() : () -> ()
    %c0_18 = arith.constant 0 : index
    %c0_19 = arith.constant 0 : index
    %c0_20 = arith.constant 0 : index
    %c0_21 = arith.constant 0 : index
    %38 = vector.load %arg8[%c0_18, %c0_19, %c0_20, %c0_21] : memref<1x4x1x8xf32, #tpu.memory_space<vmem>>, vector<1x4x1x8xf32>
    %39 = vector.shape_cast %38 : vector<1x4x1x8xf32> to vector<4x1x8xf32>
    %40 = vector.broadcast %39 : vector<4x1x8xf32> to vector<4x8x8xf32>
    %41 = arith.addf %37, %40 : vector<4x8x8xf32>
    %c0_22 = arith.constant 0 : index
    %c0_23 = arith.constant 0 : index
    %c0_24 = arith.constant 0 : index
    %c0_25 = arith.constant 0 : index
    %42 = vector.load %arg6[%c0_22, %c0_23, %c0_24, %c0_25] : memref<1x4x32x8xbf16, #tpu.memory_space<vmem>>, vector<1x4x32x8xbf16>
    %43 = vector.shape_cast %42 : vector<1x4x32x8xbf16> to vector<4x32x8xbf16>
    "tpu.trace_start"() <{level = 10 : i32, message = "hsd,hdf->hsf"}> : () -> ()
    %cst_26 = arith.constant dense<0.000000e+00> : vector<4x8x8xf32>
    %44 = tpu.matmul %34, %43, %cst_26 {dimension_numbers = #tpu.dot_dimension_numbers<[2], [1], [1], [2], [0, 0, 0, 1, 1, 2], [0], [0]>} : vector<4x8x32xbf16>, vector<4x32x8xbf16>, vector<4x8x8xf32> -> vector<4x8x8xf32>
    "tpu.trace_stop"() : () -> ()
    %c0_27 = arith.constant 0 : index
    %c0_28 = arith.constant 0 : index
    %c0_29 = arith.constant 0 : index
    %c0_30 = arith.constant 0 : index
    %45 = vector.load %arg9[%c0_27, %c0_28, %c0_29, %c0_30] : memref<1x4x1x8xf32, #tpu.memory_space<vmem>>, vector<1x4x1x8xf32>
    %46 = vector.shape_cast %45 : vector<1x4x1x8xf32> to vector<4x1x8xf32>
    %47 = vector.broadcast %46 : vector<4x1x8xf32> to vector<4x8x8xf32>
    %48 = arith.addf %44, %47 : vector<4x8x8xf32>
    %c0_31 = arith.constant 0 : index
    %c0_32 = arith.constant 0 : index
    %c0_33 = arith.constant 0 : index
    %c0_34 = arith.constant 0 : index
    %49 = vector.load %arg7[%c0_31, %c0_32, %c0_33, %c0_34] : memref<1x4x32x8xbf16, #tpu.memory_space<vmem>>, vector<1x4x32x8xbf16>
    %50 = vector.shape_cast %49 : vector<1x4x32x8xbf16> to vector<4x32x8xbf16>
    "tpu.trace_start"() <{level = 10 : i32, message = "hsd,hdf->hsf"}> : () -> ()
    %cst_35 = arith.constant dense<0.000000e+00> : vector<4x8x8xf32>
    %51 = tpu.matmul %34, %50, %cst_35 {dimension_numbers = #tpu.dot_dimension_numbers<[2], [1], [1], [2], [0, 0, 0, 1, 1, 2], [0], [0]>} : vector<4x8x32xbf16>, vector<4x32x8xbf16>, vector<4x8x8xf32> -> vector<4x8x8xf32>
    "tpu.trace_stop"() : () -> ()
    %c0_36 = arith.constant 0 : index
    %c0_37 = arith.constant 0 : index
    %c0_38 = arith.constant 0 : index
    %c0_39 = arith.constant 0 : index
    %52 = vector.load %arg10[%c0_36, %c0_37, %c0_38, %c0_39] : memref<1x4x1x8xf32, #tpu.memory_space<vmem>>, vector<1x4x1x8xf32>
    %53 = vector.shape_cast %52 : vector<1x4x1x8xf32> to vector<4x1x8xf32>
    %54 = vector.broadcast %53 : vector<4x1x8xf32> to vector<4x8x8xf32>
    %55 = arith.addf %51, %54 : vector<4x8x8xf32>
    %56 = arith.truncf %41 : vector<4x8x8xf32> to vector<4x8x8xbf16>
    %57 = arith.truncf %48 : vector<4x8x8xf32> to vector<4x8x8xbf16>
    "tpu.trace_start"() <{level = 10 : i32, message = "hqf,hkf->hqk"}> : () -> ()
    %cst_40 = arith.constant dense<0.000000e+00> : vector<4x8x8xf32>
    %58 = tpu.matmul %56, %57, %cst_40 {dimension_numbers = #tpu.dot_dimension_numbers<[2], [2], [1], [1], [0, 0, 0, 1, 1, 1], [0], [0]>} : vector<4x8x8xbf16>, vector<4x8x8xbf16>, vector<4x8x8xf32> -> vector<4x8x8xf32>
    "tpu.trace_stop"() : () -> ()
    %cst_41 = arith.constant dense<0xFF800000> : vector<4x8xf32>
    %59 = vector.multi_reduction <maximumf>, %58, %cst_41 [2] : vector<4x8x8xf32> to vector<4x8xf32>
    %60 = vector.shape_cast %59 : vector<4x8xf32> to vector<4x8x1xf32>
    %61 = vector.broadcast %60 : vector<4x8x1xf32> to vector<4x8x8xf32>
    %62 = arith.subf %58, %61 : vector<4x8x8xf32>
    %63 = math.exp %62 : vector<4x8x8xf32>
    %cst_42 = arith.constant dense<0.000000e+00> : vector<4x8xf32>
    %64 = vector.multi_reduction <add>, %63, %cst_42 [2] : vector<4x8x8xf32> to vector<4x8xf32>
    %65 = vector.shape_cast %64 : vector<4x8xf32> to vector<4x8x1xf32>
    %66 = tpu.reciprocal %65 {approx = true} : vector<4x8x1xf32> -> vector<4x8x1xf32>
    %67 = vector.broadcast %66 : vector<4x8x1xf32> to vector<4x8x8xf32>
    %68 = arith.mulf %63, %67 : vector<4x8x8xf32>
    %69 = arith.truncf %68 : vector<4x8x8xf32> to vector<4x8x8xbf16>
    %70 = arith.truncf %55 : vector<4x8x8xf32> to vector<4x8x8xbf16>
    "tpu.trace_start"() <{level = 10 : i32, message = "hqk,hkf->hqf"}> : () -> ()
    %cst_43 = arith.constant dense<0.000000e+00> : vector<4x8x8xf32>
    %71 = tpu.matmul %69, %70, %cst_43 {dimension_numbers = #tpu.dot_dimension_numbers<[2], [1], [1], [2], [0, 0, 0, 1, 1, 2], [0], [0]>} : vector<4x8x8xbf16>, vector<4x8x8xbf16>, vector<4x8x8xf32> -> vector<4x8x8xf32>
    "tpu.trace_stop"() : () -> ()
    %72 = arith.truncf %71 : vector<4x8x8xf32> to vector<4x8x8xbf16>
    %c0_44 = arith.constant 0 : index
    %c0_45 = arith.constant 0 : index
    %c0_46 = arith.constant 0 : index
    %c0_47 = arith.constant 0 : index
    %73 = vector.load %arg11[%c0_44, %c0_45, %c0_46, %c0_47] : memref<1x4x8x32xbf16, #tpu.memory_space<vmem>>, vector<1x4x8x32xbf16>
    %74 = vector.shape_cast %73 : vector<1x4x8x32xbf16> to vector<4x8x32xbf16>
    "tpu.trace_start"() <{level = 10 : i32, message = "hqf,hfd->hqd"}> : () -> ()
    %cst_48 = arith.constant dense<0.000000e+00> : vector<4x8x32xf32>
    %75 = tpu.matmul %72, %74, %cst_48 {dimension_numbers = #tpu.dot_dimension_numbers<[2], [1], [1], [2], [0, 0, 0, 1, 1, 2], [0], [0]>} : vector<4x8x8xbf16>, vector<4x8x32xbf16>, vector<4x8x32xf32> -> vector<4x8x32xf32>
    "tpu.trace_stop"() : () -> ()
    %cst_49 = arith.constant dense<0.000000e+00> : vector<8x32xf32>
    %76 = vector.multi_reduction <add>, %75, %cst_49 [0] : vector<4x8x32xf32> to vector<8x32xf32>
    %c0_50 = arith.constant 0 : index
    %c0_51 = arith.constant 0 : index
    %c0_52 = arith.constant 0 : index
    %77 = vector.load %arg12[%c0_50, %c0_51, %c0_52] : memref<1x1x32xf32, #tpu.memory_space<vmem>>, vector<1x1x32xf32>
    %78 = vector.shape_cast %77 : vector<1x1x32xf32> to vector<1x32xf32>
    %79 = vector.broadcast %78 : vector<1x32xf32> to vector<8x32xf32>
    %80 = arith.addf %76, %79 : vector<8x32xf32>
    %81 = arith.addf %4, %80 : vector<8x32xf32>
    %c0_53 = arith.constant 0 : index
    %c0_54 = arith.constant 0 : index
    %c0_55 = arith.constant 0 : index
    %82 = vector.load %arg13[%c0_53, %c0_54, %c0_55] : memref<1x1x32xf32, #tpu.memory_space<vmem>>, vector<1x1x32xf32>
    %83 = vector.shape_cast %82 : vector<1x1x32xf32> to vector<1x32xf32>
    %c0_56 = arith.constant 0 : index
    %c0_57 = arith.constant 0 : index
    %c0_58 = arith.constant 0 : index
    %84 = vector.load %arg14[%c0_56, %c0_57, %c0_58] : memref<1x1x32xf32, #tpu.memory_space<vmem>>, vector<1x1x32xf32>
    %85 = vector.shape_cast %84 : vector<1x1x32xf32> to vector<1x32xf32>
    %cst_59 = arith.constant dense<0.000000e+00> : vector<8xf32>
    %86 = vector.multi_reduction <add>, %81, %cst_59 [1] : vector<8x32xf32> to vector<8xf32>
    %87 = vector.shape_cast %86 : vector<8xf32> to vector<8x1xf32>
    %cst_60 = arith.constant 3.200000e+01 : f32
    %88 = vector.broadcast %cst_60 : f32 to vector<8x1xf32>
    %89 = arith.divf %87, %88 : vector<8x1xf32>
    %90 = vector.broadcast %89 : vector<8x1xf32> to vector<8x32xf32>
    %91 = arith.subf %81, %90 : vector<8x32xf32>
    %92 = arith.mulf %91, %91 : vector<8x32xf32>
    %cst_61 = arith.constant dense<0.000000e+00> : vector<8xf32>
    %93 = vector.multi_reduction <add>, %92, %cst_61 [1] : vector<8x32xf32> to vector<8xf32>
    %94 = vector.shape_cast %93 : vector<8xf32> to vector<8x1xf32>
    %cst_62 = arith.constant 3.200000e+01 : f32
    %95 = vector.broadcast %cst_62 : f32 to vector<8x1xf32>
    %96 = arith.divf %94, %95 : vector<8x1xf32>
    %97 = vector.broadcast %89 : vector<8x1xf32> to vector<8x32xf32>
    %98 = arith.subf %81, %97 : vector<8x32xf32>
    %cst_63 = arith.constant 9.99999974E-6 : f32
    %99 = vector.broadcast %cst_63 : f32 to vector<8x1xf32>
    %100 = arith.addf %96, %99 : vector<8x1xf32>
    %101 = math.rsqrt %100 : vector<8x1xf32>
    %102 = vector.broadcast %101 : vector<8x1xf32> to vector<8x32xf32>
    %103 = arith.mulf %98, %102 : vector<8x32xf32>
    %104 = vector.broadcast %83 : vector<1x32xf32> to vector<8x32xf32>
    %105 = arith.mulf %103, %104 : vector<8x32xf32>
    %106 = vector.broadcast %85 : vector<1x32xf32> to vector<8x32xf32>
    %107 = arith.addf %105, %106 : vector<8x32xf32>
    %108 = arith.truncf %107 : vector<8x32xf32> to vector<8x32xbf16>
    %c0_64 = arith.constant 0 : index
    %c0_65 = arith.constant 0 : index
    %c0_66 = arith.constant 0 : index
    %109 = vector.load %arg15[%c0_64, %c0_65, %c0_66] : memref<1x32x128xbf16, #tpu.memory_space<vmem>>, vector<1x32x128xbf16>
    %110 = vector.shape_cast %109 : vector<1x32x128xbf16> to vector<32x128xbf16>
    %cst_67 = arith.constant dense<0.000000e+00> : vector<8x128xf32>
    %111 = tpu.matmul %108, %110, %cst_67 {dimension_numbers = #tpu.dot_dimension_numbers<[1], [0], [0], [1], [0, 0, 1, 1], [], []>} : vector<8x32xbf16>, vector<32x128xbf16>, vector<8x128xf32> -> vector<8x128xf32>
    %c0_68 = arith.constant 0 : index
    %c0_69 = arith.constant 0 : index
    %c0_70 = arith.constant 0 : index
    %112 = vector.load %arg16[%c0_68, %c0_69, %c0_70] : memref<1x1x128xf32, #tpu.memory_space<vmem>>, vector<1x1x128xf32>
    %113 = vector.shape_cast %112 : vector<1x1x128xf32> to vector<1x128xf32>
    %114 = vector.broadcast %113 : vector<1x128xf32> to vector<8x128xf32>
    %115 = arith.addf %111, %114 : vector<8x128xf32>
    %cst_71 = arith.constant 1.702000e+00 : f32
    %116 = vector.broadcast %cst_71 : f32 to vector<8x128xf32>
    %117 = arith.mulf %116, %115 : vector<8x128xf32>
    %118 = arith.negf %117 : vector<8x128xf32>
    %119 = math.exp %118 : vector<8x128xf32>
    %cst_72 = arith.constant 1.000000e+00 : f32
    %120 = vector.broadcast %cst_72 : f32 to vector<8x128xf32>
    %121 = arith.addf %120, %119 : vector<8x128xf32>
    %122 = arith.divf %120, %121 : vector<8x128xf32>
    %123 = arith.mulf %115, %122 : vector<8x128xf32>
    %124 = arith.truncf %123 : vector<8x128xf32> to vector<8x128xbf16>
    %c0_73 = arith.constant 0 : index
    %c0_74 = arith.constant 0 : index
    %c0_75 = arith.constant 0 : index
    %125 = vector.load %arg17[%c0_73, %c0_74, %c0_75] : memref<1x128x32xbf16, #tpu.memory_space<vmem>>, vector<1x128x32xbf16>
    %126 = vector.shape_cast %125 : vector<1x128x32xbf16> to vector<128x32xbf16>
    %cst_76 = arith.constant dense<0.000000e+00> : vector<8x32xf32>
    %127 = tpu.matmul %124, %126, %cst_76 {dimension_numbers = #tpu.dot_dimension_numbers<[1], [0], [0], [1], [0, 0, 1, 1], [], []>} : vector<8x128xbf16>, vector<128x32xbf16>, vector<8x32xf32> -> vector<8x32xf32>
    %c0_77 = arith.constant 0 : index
    %c0_78 = arith.constant 0 : index
    %c0_79 = arith.constant 0 : index
    %128 = vector.load %arg18[%c0_77, %c0_78, %c0_79] : memref<1x1x32xf32, #tpu.memory_space<vmem>>, vector<1x1x32xf32>
    %129 = vector.shape_cast %128 : vector<1x1x32xf32> to vector<1x32xf32>
    %130 = vector.broadcast %129 : vector<1x32xf32> to vector<8x32xf32>
    %131 = arith.addf %127, %130 : vector<8x32xf32>
    %132 = arith.addf %81, %131 : vector<8x32xf32>
    %c0_80 = arith.constant 0 : index
    %c0_81 = arith.constant 0 : index
    %c0_82 = arith.constant 0 : index
    %133 = vector.load %arg19[%c0_80, %c0_81, %c0_82] : memref<1x8x32xf32, #tpu.memory_space<vmem>>, vector<1x8x32xf32>
    %134 = vector.shape_cast %133 : vector<1x8x32xf32> to vector<8x32xf32>
    %135 = vector.shape_cast %132 : vector<8x32xf32> to vector<1x8x32xf32>
    tpu.vector_store %arg19[%c0_80, %c0_81, %c0_82], %135 {strides = array<i32>} : memref<1x8x32xf32, #tpu.memory_space<vmem>>, vector<1x8x32xf32>,
    return
  }
  func.func @transform_0(%arg0: i32, %arg1: i32) -> (i32, i32, i32) {
    %c0_i32 = arith.constant 0 : i32
    %c0_i32_0 = arith.constant 0 : i32
    %c0_i32_1 = arith.constant 0 : i32
    return %arg0, %c0_i32, %c0_i32_0 : i32, i32, i32
  }
  func.func @transform_1(%arg0: i32, %arg1: i32) -> (i32, i32, i32) {
    %c0_i32 = arith.constant 0 : i32
    %c0_i32_0 = arith.constant 0 : i32
    %c0_i32_1 = arith.constant 0 : i32
    return %arg1, %c0_i32, %c0_i32_0 : i32, i32, i32
  }
  func.func @transform_2(%arg0: i32, %arg1: i32) -> (i32, i32, i32) {
    %c0_i32 = arith.constant 0 : i32
    %c0_i32_0 = arith.constant 0 : i32
    %c0_i32_1 = arith.constant 0 : i32
    return %arg1, %c0_i32, %c0_i32_0 : i32, i32, i32
  }
  func.func @transform_3(%arg0: i32, %arg1: i32) -> (i32, i32, i32, i32) {
    %c0_i32 = arith.constant 0 : i32
    %c0_i32_0 = arith.constant 0 : i32
    %c0_i32_1 = arith.constant 0 : i32
    %c0_i32_2 = arith.constant 0 : i32
    return %arg1, %c0_i32, %c0_i32_0, %c0_i32_1 : i32, i32, i32, i32
  }
  func.func @transform_4(%arg0: i32, %arg1: i32) -> (i32, i32, i32, i32) {
    %c0_i32 = arith.constant 0 : i32
    %c0_i32_0 = arith.constant 0 : i32
    %c0_i32_1 = arith.constant 0 : i32
    %c0_i32_2 = arith.constant 0 : i32
    return %arg1, %c0_i32, %c0_i32_0, %c0_i32_1 : i32, i32, i32, i32
  }
  func.func @transform_5(%arg0: i32, %arg1: i32) -> (i32, i32, i32, i32) {
    %c0_i32 = arith.constant 0 : i32
    %c0_i32_0 = arith.constant 0 : i32
    %c0_i32_1 = arith.constant 0 : i32
    %c0_i32_2 = arith.constant 0 : i32
    return %arg1, %c0_i32, %c0_i32_0, %c0_i32_1 : i32, i32, i32, i32
  }
  func.func @transform_6(%arg0: i32, %arg1: i32) -> (i32, i32, i32, i32) {
    %c0_i32 = arith.constant 0 : i32
    %c0_i32_0 = arith.constant 0 : i32
    %c0_i32_1 = arith.constant 0 : i32
    %c0_i32_2 = arith.constant 0 : i32
    return %arg1, %c0_i32, %c0_i32_0, %c0_i32_1 : i32, i32, i32, i32
  }
  func.func @transform_7(%arg0: i32, %arg1: i32) -> (i32, i32, i32, i32) {
    %c0_i32 = arith.constant 0 : i32
    %c0_i32_0 = arith.constant 0 : i32
    %c0_i32_1 = arith.constant 0 : i32
    %c0_i32_2 = arith.constant 0 : i32
    return %arg1, %c0_i32, %c0_i32_0, %c0_i32_1 : i32, i32, i32, i32
  }
  func.func @transform_8(%arg0: i32, %arg1: i32) -> (i32, i32, i32, i32) {
    %c0_i32 = arith.constant 0 : i32
    %c0_i32_0 = arith.constant 0 : i32
    %c0_i32_1 = arith.constant 0 : i32
    %c0_i32_2 = arith.constant 0 : i32
    return %arg1, %c0_i32, %c0_i32_0, %c0_i32_1 : i32, i32, i32, i32
  }
  func.func @transform_9(%arg0: i32, %arg1: i32) -> (i32, i32, i32, i32) {
    %c0_i32 = arith.constant 0 : i32
    %c0_i32_0 = arith.constant 0 : i32
    %c0_i32_1 = arith.constant 0 : i32
    %c0_i32_2 = arith.constant 0 : i32
    return %arg1, %c0_i32, %c0_i32_0, %c0_i32_1 : i32, i32, i32, i32
  }
  func.func @transform_10(%arg0: i32, %arg1: i32) -> (i32, i32, i32) {
    %c0_i32 = arith.constant 0 : i32
    %c0_i32_0 = arith.constant 0 : i32
    %c0_i32_1 = arith.constant 0 : i32
    return %arg1, %c0_i32, %c0_i32_0 : i32, i32, i32
  }
  func.func @transform_11(%arg0: i32, %arg1: i32) -> (i32, i32, i32) {
    %c0_i32 = arith.constant 0 : i32
    %c0_i32_0 = arith.constant 0 : i32
    %c0_i32_1 = arith.constant 0 : i32
    return %arg1, %c0_i32, %c0_i32_0 : i32, i32, i32
  }
  func.func @transform_12(%arg0: i32, %arg1: i32) -> (i32, i32, i32) {
    %c0_i32 = arith.constant 0 : i32
    %c0_i32_0 = arith.constant 0 : i32
    %c0_i32_1 = arith.constant 0 : i32
    return %arg1, %c0_i32, %c0_i32_0 : i32, i32, i32
  }
  func.func @transform_13(%arg0: i32, %arg1: i32) -> (i32, i32, i32) {
    %c0_i32 = arith.constant 0 : i32
    %c0_i32_0 = arith.constant 0 : i32
    %c0_i32_1 = arith.constant 0 : i32
    return %arg1, %c0_i32, %c0_i32_0 : i32, i32, i32
  }
  func.func @transform_14(%arg0: i32, %arg1: i32) -> (i32, i32, i32) {
    %c0_i32 = arith.constant 0 : i32
    %c0_i32_0 = arith.constant 0 : i32
    %c0_i32_1 = arith.constant 0 : i32
    return %arg1, %c0_i32, %c0_i32_0 : i32, i32, i32
  }
  func.func @transform_15(%arg0: i32, %arg1: i32) -> (i32, i32, i32) {
    %c0_i32 = arith.constant 0 : i32
    %c0_i32_0 = arith.constant 0 : i32
    %c0_i32_1 = arith.constant 0 : i32
    return %arg1, %c0_i32, %c0_i32_0 : i32, i32, i32
  }
  func.func @transform_16(%arg0: i32, %arg1: i32) -> (i32, i32, i32) {
    %c0_i32 = arith.constant 0 : i32
    %c0_i32_0 = arith.constant 0 : i32
    %c0_i32_1 = arith.constant 0 : i32
    return %arg1, %c0_i32, %c0_i32_0 : i32, i32, i32
  }
  func.func @transform_17(%arg0: i32, %arg1: i32) -> (i32, i32, i32) {
    %c0_i32 = arith.constant 0 : i32
    %c0_i32_0 = arith.constant 0 : i32
    %c0_i32_1 = arith.constant 0 : i32
    return %arg0, %c0_i32, %c0_i32_0 : i32, i32, i32
  }
}

</mosaic_0001>

<bundles_post_ra>
// kernel: tpu_custom_call.1
= control target key start
LH: loop header
LB: loop body
LE: loop exit
PB: predicated region body
PF: predicated region fallthrough
CT: control target
= control target key end

     0   :  { %s3926_s0 = inlined_call_operand.vmem [shape: f32[2,8,32], index: 0, kind: input, shape index: {}]   ;;  %s3927_s1 = inlined_call_operand.vmem [shape: f32[2,1,32], index: 1, kind: input, shape index: {}]   ;;  %s3928_s2 = inlined_call_operand.vmem [shape: f32[2,1,32], index: 2, kind: input, shape index: {}]   ;;  %s3929_s3 = inlined_call_operand.vmem [shape: bf16[2,4,32,8], index: 3, kind: input, shape index: {}]   ;;  %s3930_s4 = inlined_call_operand.vmem [shape: bf16[2,4,32,8], index: 4, kind: input, shape index: {}]   ;;  %s3931_s5 = inlined_call_operand.vmem [shape: bf16[2,4,32,8], index: 5, kind: input, shape index: {}]   ;;  %s3932_s6 = inlined_call_operand.vmem [shape: f32[2,4,1,8], index: 6, kind: input, shape index: {}]   ;;  %s3933_s7 = inlined_call_operand.vmem [shape: f32[2,4,1,8], index: 7, kind: input, shape index: {}]   ;;  %s3934_s8 = inlined_call_operand.vmem [shape: f32[2,4,1,8], index: 8, kind: input, shape index: {}]   ;;  %s3935_s9 = inlined_call_operand.vmem [shape: bf16[2,4,8,32], index: 9, kind: input, shape index: {}]   ;;  %s3936_s10 = inlined_call_operand.vmem [shape: f32[2,1,32], index: 10, kind: input, shape index: {}]   ;;  %s3937_s11 = inlined_call_operand.vmem [shape: f32[2,1,32], index: 11, kind: input, shape index: {}]   ;;  %s3938_s12 = inlined_call_operand.vmem [shape: f32[2,1,32], index: 12, kind: input, shape index: {}]   ;;  %s3939_s13 = inlined_call_operand.vmem [shape: bf16[2,32,128], index: 13, kind: input, shape index: {}]   ;;  %s3940_s14 = inlined_call_operand.vmem [shape: f32[2,1,128], index: 14, kind: input, shape index: {}]   ;;  %s3941_s15 = inlined_call_operand.vmem [shape: bf16[2,128,32], index: 15, kind: input, shape index: {}]   ;;  %s3942_s16 = inlined_call_operand.vmem [shape: f32[2,1,32], index: 16, kind: input, shape index: {}]   ;;  %s3943_s17 = inlined_call_operand.hbm [shape: f32[2,8,32], index: 17, kind: output, shape index: {}]  }
   0x1   :  { %3962 = sst [smem:[#allocation21_spill]] %s3926_s0 }
   0x2   :  { %3963 = sst [smem:[#allocation22_spill]] %s3927_s1 }
   0x3   :  { %3964 = sst [smem:[#allocation23_spill]] %s3929_s3 }
   0x4   :  { %3965 = sst [smem:[#allocation24_spill]] %s3930_s4 }
   0x5   :  { %3966 = sst [smem:[#allocation25_spill]] %s3931_s5 }
   0x6   :  { %3967 = sst [smem:[#allocation26_spill]] %s3932_s6 }
   0x7   :  { %3968 = sst [smem:[#allocation27_spill]] %s3933_s7 }
   0x8   :  { %3969 = sst [smem:[#allocation28_spill]] %s3934_s8 }
   0x9   :  { %3970 = sst [smem:[#allocation29_spill]] %s3935_s9 }
   0xa   :  { %3971 = sst [smem:[#allocation30_spill]] %s3937_s11 }
   0xb   :  { %3972 = sst [smem:[#allocation31_spill]] %s3940_s14 }
   0xc   :  { %3973 = sst [smem:[#allocation32_spill]] %s3941_s15 }
   0xd   :  { %3974 = sst [smem:[#allocation33_spill]] %s3942_s16 }
   0xe   :  { %3975 = sst [smem:[#allocation34_spill]] %s3943_s17 }
   0xf   :  { %22 = vsyncpa [#allocation3], 0 }
  0x10   :  { %24 = vsyncpa [#allocation3 + $0x1], 0  ;;  %s3436_s24 = smov 0   ;;  %s3438_s25 = smov 0  }
  0x11   :  { %s3440_s26 = smov 0   ;;  %s3442_s27 = smov 0  }
  0x12   :  { %s3444_s28 = smov 0   ;;  %s3446_s29 = smov 0  }
  0x13   :  { %s3448_s0 = smov 0   ;;  %s3450_s30 = smov 0  }
  0x14 LB: > { %3976 = sst [smem:[#allocation5_spill]] %s3313_s24  ;;  %s2736_s18 = sadd.s32 4294967295, %s3341_s30   ;;  %s3341_s30 = sphi %s3450_s30, %s30_s30   ;;  %s3337_s0 = sphi %s3448_s0, %s4034_s0   ;;  %s3333_s29 = sphi %s3446_s29, %s4033_s29   ;;  %s3329_s28 = sphi %s3444_s28, %s4032_s28   ;;  %s3325_s27 = sphi %s3442_s27, %s4031_s27   ;;  %s3321_s26 = sphi %s3440_s26, %s4030_s26   ;;  %s3317_s25 = sphi %s3438_s25, %s4029_s25   ;;  %s3313_s24 = sphi %s3436_s24, %s4028_s24  }
  0x15   : > { %3977 = sst [smem:[#allocation6_spill]] %s3317_s25  ;;  %s2737_s19 = sadd.s32 4294967294, %s3341_s30  }
  0x16   : > { %3978 = sst [smem:[#allocation7_spill]] %s3321_s26  ;;  %s39_s1 = sadd.s32 1, %s3333_s29 }
  0x17   : > { %3979 = sst [smem:[#allocation8_spill]] %s3325_s27  ;;  %p40_p0 = scmp.ge.s32.totalorder %s39_s1, 2 }
  0x18   : > { %3980 = sst [smem:[#allocation9_spill]] %s3329_s28  ;;  %s42_s20 = sadd.s32 1, %s3337_s0 }
  0x19   : > { %3981 = sst [smem:[#allocation10_spill]] %s3333_s29  ;;  %p501_p1 = scmp.ne.s32.totalorder %s3321_s26, %s3317_s25 }
  0x1a   : > { %3982 = sst [smem:[#allocation11_spill]] %s3337_s0  ;;  %p502_p2 = scmp.eq.s32.totalorder %s2736_s18, 3 }
  0x1b   : > { %3983 = sst [smem:[#allocation12_spill]] %s3341_s30  ;;  %s4036_s1 = smov (%p40_p0, %s39_s1), 0 }
  0x1c   : > { %3984 = sst [smem:[#allocation13_spill]] %s4036_s1  ;;  %s4038_s20 = smov (!%p40_p0, %s42_s20), %s3337_s0 }
  0x1d   : > { %p3485_p3 = por %p502_p2, %p501_p1  ;;  %p507_p4 = scmp.ne.s32.totalorder %s3317_s25, %s3313_s24 }
  0x1e   : > { %p44_p5 = scmp.ge.s32.totalorder %s4038_s20, 2  ;;  %p508_p6 = scmp.eq.s32.totalorder %s2737_s19, 3 }
  0x1f   : > { %s3985_s21 = scalar_select %p3485_p3, 1, 0 }
  0x20   : > { %p2740_p7 = scmp.ge.s32.totalorder %s3341_s30, 1  ;;  %p644_p8 = scmp.lt.s32.totalorder %s3341_s30, 5 }
  0x21   : > { %3986 = sst [smem:[#allocation14_spill]] %s3985_s21  ;;  %s4040_s20 = smov (%p44_p5, %s4038_s20), 0 }
  0x22   : > { %3987 = sst [smem:[#allocation15_spill]] %s4040_s20  ;;  %p3495_p9 = por %p508_p6, %p507_p4 }
  0x23   : > { %p645_p10 = pnand %p2740_p7, %p644_p8  ;;  %s488_s23 = ssub.s32 %s3337_s0, %s4040_s20 }
  0x24   : > { %s3988_s22 = scalar_select %p3495_p9, 1, 0 }
  0x25   : > { %s491_s18 = sadd.s32 1, %s3321_s26  ;;  %p489_p11 = scmp.eq.s32.totalorder %s488_s23, 0 }
  0x26   : > { %3989 = sst [smem:[#allocation16_spill]] %s3988_s22  ;;  %648 = sbr.rel (%p645_p10) target bundleno = 2407 (0x967), region = 88 }
  0x27   : > { %s3503_s1 = scalar_select %p489_p11, %s3321_s26, %s491_s18  }
  0x29   : > { %3990 = sst [smem:[#allocation17_spill]] %s3503_s1 }
  0x2d   : > { %s3952_s19 = sand.u32 1, %s3317_s25   ;;  %p758_p12 = scmp.lt.s32.totalorder %s3329_s28, 1 }
  0x2e   : > { %s2741_s29 = sshll.u32 %s3952_s19, 3  ;;  %p762_p13 = scmp.lt.s32.totalorder %s3325_s27, 1 }
  0x2f   : > { %s759_s24 = scalar_select %p758_p12, %s3329_s28, 1 }
  0x30   : > { %s3512_s22 = scalar_select %p762_p13, %s3325_s27, 1 }
  0x31   : > { %s2742_s23 = sshll.u32 %s759_s24, 3  ;;  %s3991_s0 = sld [smem:[#allocation21_spill]] }
  0x32   : > { %s2842_s27 = sshll.u32 %s3512_s22, 6  ;;  %s3993_s3 = sld [smem:[#allocation23_spill]] }
  0x33   : > { %s3994_s4 = sld [smem:[#allocation24_spill]]  ;;  %s3995_s5 = sld [smem:[#allocation25_spill]] }
  0x34   : > { %s2749_s25 = sshll.u32 %s3512_s22, 2  ;;  %s3996_s6 = sld [smem:[#allocation26_spill]] }
  0x35   : > { %s3998_s7 = sld [smem:[#allocation27_spill]]  ;;  %s3999_s8 = sld [smem:[#allocation28_spill]] }
  0x36   : > { %s4001_s9 = sld [smem:[#allocation29_spill]]  ;;  %s808_s17 = scalar_lea.vmem %s3938_s12, %s3512_s22 }
  0x37   : > { %s761_s1 = scalar_lea.vmem %s3991_s0, %s2742_s23  ;;  %s4005_s21 = sld [smem:[#allocation32_spill]] }
  0x38   : > { %s3529_s24 = scalar_lea.vmem %s3993_s3, %s2842_s27  ;;  %s2845_s3 = sshll.u32 %s3512_s22, 4 }
  0x39   : > { %s3534_s0 = scalar_lea.vmem %s3994_s4, %s2842_s27  ;;  %s3539_s30 = scalar_lea.vmem %s3995_s5, %s2842_s27 }
  0x3a   : > { %s3545_s18 = scalar_lea.vmem %s3996_s6, %s2749_s25  ;;  %s4006_s15 = sld [smem:[#allocation33_spill]] }
  0x3b   : > { %3997 = sst [smem:[#allocation18_spill]] %s3545_s18  ;;  %s3550_s28 = scalar_lea.vmem %s3998_s7, %s2749_s25 }
  0x3c   : > { %s3555_s20 = scalar_lea.vmem %s3999_s8, %s2749_s25  ;;  %s3561_s4 = scalar_lea.vmem %s4001_s9, %s2845_s3 }
  0x3d   : > { %4000 = sst [smem:[#allocation19_spill]] %s3555_s20  ;;  %s3578_s8 = scalar_lea.vmem %s3939_s13, %s2845_s3 }
  0x3e   : > { %4002 = sst [smem:[#allocation20_spill]] %s3561_s4  ;;  %s4004_s9 = sld [smem:[#allocation31_spill]] }
  0x3f   : > { %s3587_s19 = scalar_lea.vmem %s4005_s21, %s2842_s27  ;;  %s3593_s7 = scalar_lea.vmem [#allocation2], %s2741_s29 }
  0x40   : > { %s824_s11 = scalar_lea.vmem %s4006_s15, %s3512_s22  ;;  %s4007_s16 = sld [smem:[#allocation8_spill]] }
  0x44   : > { %s816_s4 = scalar_lea.vmem %s4004_s9, %s3512_s22 }
  0x46   : > { %p2758_p0 = scmp.ne.s32.totalorder %s4007_s16, 0 }
  0x47   : > { %v830_v0 = vld [vmem:[%s761_s1] sm:$0xff] (!%p2758_p0)  ;;  %vm831_vm0 = vcmask (!%p2758_p0), 261120  }
  0x48   : > { %829 = sbr.rel (%p2758_p0) target bundleno = 79 (0x4f), region = 92  ;;  %832 = vst.msk [vmem:[%s3593_s7] sm:$0xff] (!%p2758_p0), %vm831_vm0, %v830_v0 }
  0x4f PF: > { %v3598_v1 = vld [vmem:[%s3593_s7] sm:$0xff]  ;;  %vm836_vm1 = vcmask 261120   ;;  %v3190_v9 = vld [vmem:[%s3529_s24 + $0x30] sm:$0xff]   ;;  %v3343_v10 = vmov 0.0   ;;  %v3192_v12 = vld [vmem:[%s3529_s24 + $0x38] sm:$0xff]   ;;  %vm3344_vm2 = vmmov 0   ;;  %s4010_s15 = scalar_lea.vmem %s3928_s2, %s3512_s22  ;;  %s4014_s14 = scalar_lea.vmem %s3936_s10, %s3512_s22 }
  0x50   : > { %v837_v2 = vsel %vm836_vm1, %v3598_v1, 0.0  ;;  %v3189_v8 = vld [vmem:[%s3529_s24] sm:$0xff]   ;;  %2920 = vmatprep.subr.bf16.mxu0 %v3343_v10  ;;  %2944 = vmatprep.subr.bf16.mxu1 %v3343_v10  ;;  %v3191_v11 = vld [vmem:[%s3529_s24 + $0x8] sm:$0xff]   ;;  %s4008_s27 = sld [smem:[#allocation22_spill]]  ;;  %v3193_v22 = vld [vmem:[%s3529_s24 + $0x10] sm:$0xff]   ;;  %vm1633_vm3 = vcmask 64512  }
  0x51   : > { %838 = vadd.xlane.f32.xlu0 %v837_v2  ;;  %2921 = vmatpush3.bf16.msra.mxu0 %v3189_v8  ;;  %v2760_v19 = vld [vmem:[%s4010_s15] ss:$0 sm:$0xff]  ;;  %v3194_v23 = vld [vmem:[%s3534_s0 + $0x10] sm:$0xff]   ;;  %v3195_v25 = vld [vmem:[%s3529_s24 + $0x18] sm:$0xff]   ;;  %vm1873_vm4 = vcmask 1043456   ;;  %s4015_s5 = sld [smem:[#allocation30_spill]] }
  0x52   : > { %2945 = vmatpush3.bf16.msra.mxu1 %v3190_v9  ;;  %2922 = vmatprep.subr.bf16.mxu0 %v3343_v10  ;;  %v3196_v26 = vld [vmem:[%s3534_s0 + $0x18] sm:$0xff]   ;;  %v3197_v27 = vld [vmem:[%s3529_s24 + $0x20] sm:$0xff]   ;;  %v3198_v28 = vld [vmem:[%s3534_s0 + $0x30] sm:$0xff]   ;;  %s4018_s3 = sld [smem:[#allocation9_spill]]  ;;  %s2495_s20 = sshll.u32 %s3593_s7, 4  ;;  %s3871_s20 = int_to_ptr.vmem [resolvable:$true] %s2495_s20 }
  0x53   : > { %2946 = vmatprep.subr.bf16.mxu1 %v3343_v10  ;;  %2924 = vmatprep.mubr.msk.bf16.mxu0 %vm3344_vm2, %v3343_v10  ;;  %v3199_v29 = vld [vmem:[%s3529_s24 + $0x28] sm:$0xff]   ;;  %v3200_v30 = vld [vmem:[%s3534_s0 + $0x38] sm:$0xff]   ;;  %v3201_v31 = vld [vmem:[%s3534_s0] sm:$0xff]   ;;  %s4011_s24 = sld [smem:[#allocation18_spill]]  ;;  %s3345_s25 = smov [#allocation2]  }
  0x54   : > { %2948 = vmatprep.mubr.msk.bf16.mxu1 %vm3344_vm2, %v3343_v10  ;;  %v3202_v32 = vld [vmem:[%s3539_s30 + $0x10] sm:$0xff]   ;;  %v3203_v33 = vld [vmem:[%s3534_s0 + $0x8] sm:$0xff]   ;;  %v3204_v34 = vld [vmem:[%s3539_s30 + $0x18] sm:$0xff]   ;;  %s3251_s23 = sshll.u32 %s3345_s25, 4  ;;  %s3252_s23 = int_to_ptr.vmem [resolvable:$false] %s3251_s23 }
  0x55   : > { %2923 = vmatpush3.bf16.msra.mxu0 %v3191_v11  ;;  %v3205_v35 = vld [vmem:[%s3534_s0 + $0x20] sm:$0xff]   ;;  %v3206_v36 = vld [vmem:[%s3539_s30 + $0x30] sm:$0xff]   ;;  %v3207_v37 = vld [vmem:[%s3534_s0 + $0x28] sm:$0xff]   ;;  %s4012_s0 = sld [smem:[#allocation19_spill]]  ;;  %s3253_s26 = scalar_lea.vmem %s3252_s23, 256 }
  0x56   : > { %2947 = vmatpush3.bf16.msra.mxu1 %v3192_v12  ;;  %2928 = vmatprep.subr.bf16.mxu0 %v3343_v10  ;;  %s4009_s29 = scalar_lea.vmem %s4008_s27, %s3512_s22  ;;  %v3208_v38 = vld [vmem:[%s3539_s30 + $0x38] sm:$0xff]   ;;  %v3209_v39 = vld [vmem:[%s3539_s30] sm:$0xff]   ;;  %v3210_v40 = vld [vmem:[%s3539_s30 + $0x8] sm:$0xff]   ;;  %p3254_p5 = scmp.lt.s32.totalorder %s3871_s20, %s3252_s23 }
  0x57   : > { %2960 = vmatprep.subr.bf16.mxu1 %v3343_v10  ;;  %v2759_v17 = vld [vmem:[%s4009_s29] ss:$0 sm:$0xff]  ;;  %v3212_v42 = vld [vmem:[%s3539_s30 + $0x28] sm:$0xff]   ;;  %v2778_v51 = vld [vmem:[%s3550_s28 + $0x1] ss:$0 sm:$0xff]  ;;  %s4016_s21 = scalar_lea.vmem %s4015_s5, %s3512_s22 }
  0x58   : > { %v3211_v41 = vld [vmem:[%s3539_s30 + $0x20] sm:$0xff]   ;;  %s2839_s1 = sshll.u32 %s4018_s3, 7  ;;  %s3247_s30 = scalar_lea.vmem %s3871_s20, 128 }
  0x59   : > { %v2762_v62 = vld [vmem:[%s4011_s24 + $0x1] ss:$0 sm:$0xff]  ;;  %v2780_v0 = vld [vmem:[%s3550_s28 + $0x3] ss:$0 sm:$0xff]  ;;  %p3248_p1 = scmp.ne.s32.totalorder %s3871_s20, %s3247_s30  ;;  %p3255_p6 = scmp.lt.s32.totalorder %s3253_s26, %s3247_s30 }
  0x5b   : > { %p3249_p2 = pnand %p3248_p1, %p3485_p3  ;;  %p3256_p7 = por %p3255_p6, %p3254_p5 }
  0x5d   : > { %p3250_p4 = pneg %p3249_p2 }
  0x5f   : > { %p3257_p8 = pnand %p3256_p7, %p3250_p4 }
  0xde   : > { %v839_v3 = vpop.xlane.xlu0 %838 }
  0xdf   : > { %v841_v4 = vmul.f32 0.03125, %v839_v3 }
  0xe1   : > { %v842_v5 = vsub.f32 %v3598_v1, %v841_v4 }
  0xe3   : > { %v843_v6 = vmul.f32 %v842_v5, %v842_v5 }
  0xe5   : > { %v844_v7 = vsel %vm836_vm1, %v843_v6, 0.0 }
  0xe6   : > { %845 = vadd.xlane.f32.xlu0 %v844_v7 }
 0x173   : > { %v846_v13 = vpop.xlane.xlu0 %845 }
 0x174   : > { %v847_v14 = vmul.f32 0.03125, %v846_v13 }
 0x176   : > { %v848_v15 = vadd.f32 1e-05, %v847_v14 }
 0x178   : > { %3223 = vrsqrt.f32 %v848_v15  ;;  %v2764_v15 = vld [vmem:[%s4011_s24 + $0x3] ss:$0 sm:$0xff] }
 0x182   : > { %v3224_v16 = vpop.eup %3223 }
 0x183   : > { %v850_v18 = vmul.f32 %v3224_v16, %v842_v5 }
 0x185   : > { %v857_v20 = vmul.f32 %v2759_v17, %v850_v18  ;;  %v2777_v17 = vld [vmem:[%s3550_s28] ss:$0 sm:$0xff]  ;;  %v2794_v18 = vld [vmem:[%s4012_s0 + $0x1] ss:$0 sm:$0xff] }
 0x187   : > { %v864_v21 = vadd.f32 %v2760_v19, %v857_v20 }
 0x189   : > { %v3630_v24 = vpack.c.bf16 %v864_v21, %v864_v21 }
 0x18b   : > { %2925 = vmatmul.mubr.msk.bf16.vlgmr.msra.gmra.mrb[0].mxu0 %vm836_vm1, %v3630_v24  ;;  %2949 = vmatmul.mubr.msk.bf16.vlgmr.msra.gmra.mrb[0].mxu1 %vm836_vm1, %v3630_v24 }
 0x18c   : > { %2929 = vmatpush3.bf16.msra.mxu0 %v3193_v22  ;;  %2961 = vmatpush3.bf16.msra.mxu1 %v3194_v23 }
 0x18d   : > { %2930 = vmatprep.subr.bf16.mxu0 %v3343_v10  ;;  %2962 = vmatprep.subr.bf16.mxu1 %v3343_v10 }
 0x18e   : > { %2932 = vmatprep.mubr.msk.bf16.mxu0 %vm3344_vm2, %v3343_v10  ;;  %2964 = vmatprep.mubr.msk.bf16.mxu1 %vm3344_vm2, %v3343_v10 }
 0x190   : > { %2931 = vmatpush3.bf16.msra.mxu0 %v3195_v25  ;;  %2963 = vmatpush3.bf16.msra.mxu1 %v3196_v26 }
 0x191   : > { %2936 = vmatprep.subr.bf16.mxu0 %v3343_v10  ;;  %2976 = vmatprep.subr.bf16.mxu1 %v3343_v10 }
 0x193   : > { %2933 = vmatmul.mubr.msk.bf16.vlgmr.msra.gmra.mrb[4].mxu0 %vm836_vm1, %v3630_v24  ;;  %2965 = vmatmul.mubr.msk.bf16.vlgmr.msra.gmra.mrb[4].mxu1 %vm836_vm1, %v3630_v24 }
 0x194   : > { %2937 = vmatpush3.bf16.msra.mxu0 %v3197_v27  ;;  %2977 = vmatpush3.bf16.msra.mxu1 %v3198_v28 }
 0x195   : > { %2938 = vmatprep.subr.bf16.mxu0 %v3343_v10  ;;  %2978 = vmatprep.subr.bf16.mxu1 %v3343_v10 }
 0x196   : > { %2940 = vmatprep.mubr.msk.bf16.mxu0 %vm3344_vm2, %v3343_v10  ;;  %2980 = vmatprep.mubr.msk.bf16.mxu1 %vm3344_vm2, %v3343_v10 }
 0x198   : > { %2939 = vmatpush3.bf16.msra.mxu0 %v3199_v29  ;;  %2979 = vmatpush3.bf16.msra.mxu1 %v3200_v30 }
 0x199   : > { %2952 = vmatprep.subr.bf16.mxu0 %v3343_v10  ;;  %2992 = vmatprep.subr.bf16.mxu1 %v3343_v10 }
 0x19b   : > { %2941 = vmatmul.mubr.msk.bf16.vlgmr.msra.gmra.mrb[8].mxu0 %vm836_vm1, %v3630_v24  ;;  %2981 = vmatmul.mubr.msk.bf16.vlgmr.msra.gmra.mrb[8].mxu1 %vm836_vm1, %v3630_v24 }
 0x19c   : > { %2953 = vmatpush3.bf16.msra.mxu0 %v3201_v31  ;;  %2993 = vmatpush3.bf16.msra.mxu1 %v3202_v32 }
 0x19d   : > { %2954 = vmatprep.subr.bf16.mxu0 %v3343_v10  ;;  %2994 = vmatprep.subr.bf16.mxu1 %v3343_v10 }
 0x19e   : > { %2956 = vmatprep.mubr.msk.bf16.mxu0 %vm3344_vm2, %v3343_v10  ;;  %2996 = vmatprep.mubr.msk.bf16.mxu1 %vm3344_vm2, %v3343_v10 }
 0x1a0   : > { %2955 = vmatpush3.bf16.msra.mxu0 %v3203_v33  ;;  %2995 = vmatpush3.bf16.msra.mxu1 %v3204_v34  ;;  %v2761_v33 = vld [vmem:[%s4011_s24] ss:$0 sm:$0xff] }
 0x1a1   : > { %2968 = vmatprep.subr.bf16.mxu0 %v3343_v10  ;;  %3008 = vmatprep.subr.bf16.mxu1 %v3343_v10 }
 0x1a3   : > { %2957 = vmatmul.mubr.msk.bf16.vlgmr.msra.gmra.mrb[12].mxu0 %vm836_vm1, %v3630_v24  ;;  %2997 = vmatmul.mubr.msk.bf16.vlgmr.msra.gmra.mrb[12].mxu1 %vm836_vm1, %v3630_v24 }
 0x1a4   : > { %2969 = vmatpush3.bf16.msra.mxu0 %v3205_v35  ;;  %3009 = vmatpush3.bf16.msra.mxu1 %v3206_v36  ;;  %v2779_v36 = vld [vmem:[%s3550_s28 + $0x2] ss:$0 sm:$0xff]  ;;  %s4013_s28 = sld [smem:[#allocation20_spill]] }
 0x1a5   : > { %2970 = vmatprep.subr.bf16.mxu0 %v3343_v10  ;;  %3010 = vmatprep.subr.bf16.mxu1 %v3343_v10 }
 0x1a6   : > { %2972 = vmatprep.mubr.msk.bf16.mxu0 %vm3344_vm2, %v3343_v10  ;;  %3012 = vmatprep.mubr.msk.bf16.mxu1 %vm3344_vm2, %v3343_v10 }
 0x1a8   : > { %2971 = vmatpush3.bf16.msra.mxu0 %v3207_v37  ;;  %3011 = vmatpush3.bf16.msra.mxu1 %v3208_v38 }
 0x1a9   : > { %2984 = vmatprep.subr.bf16.mxu0 %v3343_v10  ;;  %3022 = vmatprep.subr.bf16.mxu1 %v3343_v10 }
 0x1ab   : > { %2973 = vmatmul.mubr.msk.bf16.vlgmr.msra.gmra.mrb[16].mxu0 %vm836_vm1, %v3630_v24  ;;  %3013 = vmatmul.mubr.msk.bf16.vlgmr.msra.gmra.mrb[16].mxu1 %vm836_vm1, %v3630_v24 }
 0x1ac   : > { %2985 = vmatpush3.bf16.msra.mxu0 %v3209_v39  ;;  %2988 = vmatprep.mubr.msk.bf16.mxu0 %vm3344_vm2, %v3343_v10 }
 0x1ad   : > { %2986 = vmatprep.subr.bf16.mxu0 %v3343_v10  ;;  %3024 = vmatprep.mubr.msk.bf16.mxu1 %vm3344_vm2, %v3343_v10 }
 0x1b0   : > { %2987 = vmatpush3.bf16.msra.mxu0 %v3210_v40 }
 0x1b1   : > { %3000 = vmatprep.subr.bf16.mxu0 %v3343_v10 }
 0x1b3   : > { %2989 = vmatmul.mubr.msk.bf16.vlgmr.msra.gmra.mrb[20].mxu0 %vm836_vm1, %v3630_v24 }
 0x1b4   : > { %3001 = vmatpush3.bf16.msra.mxu0 %v3211_v41  ;;  %3004 = vmatprep.mubr.msk.bf16.mxu0 %vm3344_vm2, %v3343_v10 }
 0x1b5   : > { %3002 = vmatprep.subr.bf16.mxu0 %v3343_v10 }
 0x1b8   : > { %3003 = vmatpush3.bf16.msra.mxu0 %v3212_v42 }
 0x1b9   : > { %3016 = vmatprep.subr.bf16.mxu0 %v3343_v10 }
 0x1bb   : > { %3005 = vmatmul.mubr.msk.bf16.vlgmr.msra.gmra.mrb[24].mxu0 %vm836_vm1, %v3630_v24 }
 0x1bc   : > { %3018 = vmatprep.mubr.msk.bf16.mxu0 %vm3344_vm2, %v3343_v10 }
 0x25e   : > { %v3718_v43 = vpop.f32.mrb[0].mxu0  ;;  %v1115_v44 = vpop.f32.mrb[0].mxu1 }
 0x25f   : > { %v2926_v45 = vpop.f32.mrb[1].mxu0  ;;  %v2950_v46 = vpop.f32.mrb[1].mxu1  ;;  %v1116_v19 = vadd.f32 %v2764_v15, %v1115_v44  ;;  %v960_v37 = vadd.f32 %v2761_v33, %v3718_v43 }
 0x260   : > { %v962_v47 = vpop.f32.mrb[2].mxu0  ;;  %v1118_v48 = vpop.f32.mrb[2].mxu1 }
 0x261   : > { %v2927_v49 = vpop.f32.mrb[3].mxu0  ;;  %v2951_v50 = vpop.f32.mrb[3].mxu1  ;;  %v1628_v28 = vpack.c.bf16 %v1116_v19, %v1116_v19  ;;  %v1625_v46 = vpack.c.bf16 %v960_v37, %v960_v37 }
 0x262   : > { %v2763_v49 = vld [vmem:[%s4011_s24 + $0x2] ss:$0 sm:$0xff] }
 0x266   : > { %v1011_v52 = vpop.f32.mrb[4].mxu0  ;;  %v1263_v53 = vpop.f32.mrb[4].mxu1 }
 0x267   : > { %v1264_v54 = vadd.f32 %v2778_v51, %v1263_v53  ;;  %v2934_v55 = vpop.f32.mrb[5].mxu0  ;;  %v2966_v56 = vpop.f32.mrb[5].mxu1  ;;  %v1012_v2 = vadd.f32 %v2762_v62, %v1011_v52  ;;  %v2793_v51 = vld [vmem:[%s4012_s0] ss:$0 sm:$0xff] }
 0x268   : > { %v1014_v57 = vpop.f32.mrb[6].mxu0  ;;  %v1266_v58 = vpop.f32.mrb[6].mxu1 }
 0x269   : > { %v1630_v59 = vpack.c.bf16 %v1264_v54, %v1264_v54  ;;  %v2935_v60 = vpop.f32.mrb[7].mxu0  ;;  %v2967_v61 = vpop.f32.mrb[7].mxu1  ;;  %v1626_v11 = vpack.c.bf16 %v1012_v2, %v1012_v2 }
 0x26b   : > { %v1684_v63 = vsel %vm1633_vm3, %v1630_v59, 0 }
 0x26c   : > { %3023 = vmatpush3.bf16.xpose.msra.mxu1 %v1684_v63 }
 0x26d   : > { %3034 = vmatprep.subr.bf16.mxu1 %v3343_v10 }
 0x26e   : > { %v1063_v3 = vpop.f32.mrb[8].mxu0  ;;  %v1367_v4 = vpop.f32.mrb[8].mxu1 }
 0x26f   : > { %v1368_v5 = vadd.f32 %v2780_v0, %v1367_v4  ;;  %v2942_v6 = vpop.f32.mrb[9].mxu0  ;;  %v2982_v7 = vpop.f32.mrb[9].mxu1  ;;  %v1064_v52 = vadd.f32 %v2763_v49, %v1063_v3  ;;  %v2796_v49 = vld [vmem:[%s4012_s0 + $0x3] ss:$0 sm:$0xff] }
 0x270   : > { %v1066_v8 = vpop.f32.mrb[10].mxu0  ;;  %v1370_v9 = vpop.f32.mrb[10].mxu1 }
 0x271   : > { %v1632_v12 = vpack.c.bf16 %v1368_v5, %v1368_v5  ;;  %v2943_v13 = vpop.f32.mrb[11].mxu0  ;;  %v2983_v14 = vpop.f32.mrb[11].mxu1  ;;  %v1627_v57 = vpack.c.bf16 %v1064_v52, %v1064_v52 }
 0x273   : > { %v1776_v16 = vsel %vm1633_vm3, %v1632_v12, 0  ;;  %3025 = vmatmul.mubr.msk.bf16.vlgmr.msra.gmra.mrb[20].mxu1 %vm1633_vm3, %v1626_v11 }
 0x274   : > { %3035 = vmatpush3.bf16.xpose.msra.mxu1 %v1776_v16  ;;  %3036 = vmatprep.mubr.msk.bf16.mxu1 %vm3344_vm2, %v3343_v10 }
 0x275   : > { %3046 = vmatprep.subr.bf16.mxu1 %v3343_v10 }
 0x276   : > { %v1211_v20 = vpop.f32.mrb[12].mxu0  ;;  %v1515_v21 = vpop.f32.mrb[12].mxu1 }
 0x277   : > { %v1212_v22 = vadd.f32 %v2777_v17, %v1211_v20  ;;  %v1516_v23 = vadd.f32 %v2794_v18, %v1515_v21  ;;  %v2958_v24 = vpop.f32.mrb[13].mxu0  ;;  %v2998_v25 = vpop.f32.mrb[13].mxu1 }
 0x278   : > { %v1214_v26 = vpop.f32.mrb[14].mxu0  ;;  %v1518_v27 = vpop.f32.mrb[14].mxu1 }
 0x279   : > { %v1629_v29 = vpack.c.bf16 %v1212_v22, %v1212_v22  ;;  %v1867_v30 = vpack.c.bf16 %v1516_v23, %v1516_v23  ;;  %v2959_v31 = vpop.f32.mrb[15].mxu0  ;;  %v2999_v32 = vpop.f32.mrb[15].mxu1 }
 0x27b   : > { %v1638_v34 = vsel %vm1633_vm3, %v1629_v29, 0  ;;  %v1921_v35 = vsel %vm1873_vm4, %v1867_v30, 0  ;;  %3037 = vmatmul.mubr.msk.bf16.vlgmr.msra.gmra.mrb[24].mxu1 %vm1633_vm3, %v1628_v28 }
 0x27c   : > { %3017 = vmatpush3.bf16.xpose.msra.mxu0 %v1638_v34  ;;  %3047 = vmatpush3.bf16.msra.mxu1 %v1921_v35 }
 0x27d   : > { %3028 = vmatprep.subr.bf16.mxu0 %v3343_v10  ;;  %3048 = vmatprep.mubr.msk.bf16.mxu1 %vm3344_vm2, %v3343_v10 }
 0x27e   : > { %v1315_v38 = vpop.f32.mrb[16].mxu0  ;;  %v3742_v39 = vpop.f32.mrb[16].mxu1  ;;  %3058 = vmatprep.subr.bf16.mxu1 %v3343_v10 }
 0x27f   : > { %v1316_v40 = vadd.f32 %v2779_v36, %v1315_v38  ;;  %v2974_v41 = vpop.f32.mrb[17].mxu0  ;;  %v3014_v42 = vpop.f32.mrb[17].mxu1  ;;  %v1620_v52 = vadd.f32 %v2796_v49, %v3742_v39 }
 0x280   : > { %v1318_v44 = vpop.f32.mrb[18].mxu0  ;;  %v1622_v45 = vpop.f32.mrb[18].mxu1 }
 0x281   : > { %v1631_v47 = vpack.c.bf16 %v1316_v40, %v1316_v40  ;;  %v2975_v48 = vpop.f32.mrb[19].mxu0  ;;  %v3015_v43 = vpop.f32.mrb[19].mxu1 }
 0x283   : > { %v1730_v50 = vsel %vm1633_vm3, %v1631_v47, 0  ;;  %3019 = vmatmul.mubr.msk.bf16.vlgmr.msra.gmra.mrb[28].mxu0 %vm1633_vm3, %v1625_v46  ;;  %v2795_v47 = vld [vmem:[%s4012_s0 + $0x2] ss:$0 sm:$0xff]  ;;  %s4022_s0 = sld [smem:[#allocation34_spill]] }
 0x284   : > { %3029 = vmatpush3.bf16.xpose.msra.mxu0 %v1730_v50  ;;  %3030 = vmatprep.mubr.msk.bf16.mxu0 %vm3344_vm2, %v3343_v10 }
 0x285   : > { %3040 = vmatprep.subr.bf16.mxu0 %v3343_v10 }
 0x286   : > { %v1463_v53 = vpop.f32.mrb[20].mxu0 }
 0x287   : > { %v1464_v54 = vadd.f32 %v2793_v51, %v1463_v53  ;;  %v2990_v55 = vpop.f32.mrb[21].mxu0 }
 0x288   : > { %v1466_v56 = vpop.f32.mrb[22].mxu0 }
 0x289   : > { %v1866_v58 = vpack.c.bf16 %v1464_v54, %v1464_v54  ;;  %v2991_v59 = vpop.f32.mrb[23].mxu0 }
 0x28b   : > { %v1875_v60 = vsel %vm1873_vm4, %v1866_v58, 0  ;;  %3031 = vmatmul.mubr.msk.bf16.vlgmr.msra.gmra.mrb[32].mxu0 %vm1633_vm3, %v1627_v57  ;;  %v1869_v57 = vpack.c.bf16 %v1620_v52, %v1620_v52 }
 0x28c   : > { %3041 = vmatpush3.bf16.msra.mxu0 %v1875_v60  ;;  %3042 = vmatprep.mubr.msk.bf16.mxu0 %vm3344_vm2, %v3343_v10 }
 0x28d   : > { %3052 = vmatprep.subr.bf16.mxu0 %v3343_v10 }
 0x28e   : > { %v1567_v61 = vpop.f32.mrb[24].mxu0 }
 0x28f   : > { %v3006_v62 = vpop.f32.mrb[25].mxu0  ;;  %v1568_v48 = vadd.f32 %v2795_v47, %v1567_v61 }
 0x290   : > { %v1570_v63 = vpop.f32.mrb[26].mxu0  ;;  %v2013_v62 = vsel %vm1873_vm4, %v1869_v57, 0 }
 0x291   : > { %v3007_v0 = vpop.f32.mrb[27].mxu0  ;;  %v1868_v53 = vpack.c.bf16 %v1568_v48, %v1568_v48  ;;  %v2059_v63 = vld [vmem:[%s4013_s28] sm:$0xf] }
 0x293   : > { %v1967_v58 = vsel %vm1873_vm4, %v1868_v53, 0  ;;  %v2821_v53 = vld [vmem:[%s4014_s14] ss:$0 sm:$0xff]  ;;  %s4023_s14 = smov %s4022_s0 }
 0x346   : > { %v1720_v2 = vpop.f32.mrb[20].mxu1 }
 0x347   : > { %v3026_v3 = vpop.f32.mrb[21].mxu1  ;;  %v1821_v16 = vsel %vm1633_vm3, %v1720_v2, -inf }
 0x348   : > { %v1723_v4 = vpop.f32.mrb[22].mxu1 }
 0x349   : > { %v3027_v5 = vpop.f32.mrb[23].mxu1  ;;  %v2067_v4 = vsel %vm1873_vm4, %v2059_v63, 0 }
 0x34e   : > { %v1812_v6 = vpop.f32.mrb[24].mxu1 }
 0x34f   : > { %v3038_v7 = vpop.f32.mrb[25].mxu1  ;;  %v1827_v19 = vsel %vm1633_vm3, %v1812_v6, -inf }
 0x350   : > { %v1815_v8 = vpop.f32.mrb[26].mxu1 }
 0x351   : > { %v3039_v9 = vpop.f32.mrb[27].mxu1  ;;  %v2061_v8 = vld [vmem:[%s4013_s28 + $0x8] sm:$0xf] }
 0x356   : > { %v1674_v11 = vpop.f32.mrb[28].mxu0 }
 0x357   : > { %v3020_v12 = vpop.f32.mrb[29].mxu0  ;;  %v1818_v13 = vsel %vm1633_vm3, %v1674_v11, -inf }
 0x358   : > { %1819 = vmax.xlane.f32.xlu1 %v1818_v13  ;;  %v1677_v14 = vpop.f32.mrb[30].mxu0  ;;  %v2159_v13 = vsel %vm1873_vm4, %v2061_v8, 0 }
 0x359   : > { %v3021_v15 = vpop.f32.mrb[31].mxu0 }
 0x35a   : > { %v2062_v15 = vld [vmem:[%s4013_s28 + $0xc] sm:$0xf] }
 0x35c   : > { %1822 = vmax.xlane.f32.xlu1 %v1821_v16 }
 0x35e   : > { %v1766_v17 = vpop.f32.mrb[32].mxu0 }
 0x35f   : > { %v3032_v18 = vpop.f32.mrb[33].mxu0  ;;  %v1824_v20 = vsel %vm1633_vm3, %v1766_v17, -inf }
 0x360   : > { %1828 = vmax.xlane.f32.xlu1 %v1827_v19  ;;  %1825 = vmax.xlane.f32.xlu0 %v1824_v20  ;;  %v1769_v21 = vpop.f32.mrb[34].mxu0  ;;  %v2205_v20 = vsel %vm1873_vm4, %v2062_v15, 0  ;;  %v3216_v15 = vld [vmem:[%s3587_s19 + $0x8] sm:$0xff]  }
 0x361   : > { %v3033_v22 = vpop.f32.mrb[35].mxu0 }
 0x3e5   : > { %v1820_v23 = vpop.xlane.xlu1 %1819 }
 0x3e6   : > { %v1830_v24 = vsub.f32 %v1674_v11, %v1820_v23 }
 0x3e8   : > { %v1834_v25 = vmul.f32 1.442695, %v1830_v24 }
 0x3e9   : > { %v1823_v26 = vpop.xlane.xlu1 %1822 }
 0x3ea   : > { %3225 = vpow2.f32 %v1834_v25  ;;  %v1831_v27 = vsub.f32 %v1720_v2, %v1823_v26 }
 0x3ec   : > { %v1836_v28 = vmul.f32 1.442695, %v1831_v27 }
 0x3ed   : > { %v1829_v29 = vpop.xlane.xlu1 %1828  ;;  %v1826_v30 = vpop.xlane.xlu0 %1825 }
 0x3ee   : > { %3227 = vpow2.f32 %v1836_v28  ;;  %v1833_v31 = vsub.f32 %v1812_v6, %v1829_v29  ;;  %v1832_v32 = vsub.f32 %v1766_v17, %v1826_v30  ;;  %v2060_v6 = vld [vmem:[%s4013_s28 + $0x4] sm:$0xf]  ;;  %s3869_s28 = scalar_lea.hbm %s4022_s0, %s2839_s1 }
 0x3ef   : > { %v2113_v7 = vsel %vm1873_vm4, %v2060_v6, 0 }
 0x3f0   : > { %v1840_v33 = vmul.f32 1.442695, %v1833_v31  ;;  %v1838_v34 = vmul.f32 1.442695, %v1832_v32 }
 0x3f2   : > { %3229 = vpow2.f32 %v1840_v33 }
 0x3f3   : > { %3231 = vpow2.f32 %v1838_v34 }
 0x3f4   : > { %v3226_v35 = vpop.eup %3225 }
 0x3f5   : > { %v1842_v36 = vsel %vm1633_vm3, %v3226_v35, 0.0 }
 0x3f6   : > { %1843 = vadd.xlane.f32.xlu0 %v1842_v36 }
 0x3f8   : > { %v3228_v37 = vpop.eup %3227 }
 0x3f9   : > { %v1845_v38 = vsel %vm1633_vm3, %v3228_v37, 0.0 }
 0x3fa   : > { %1846 = vadd.xlane.f32.xlu1 %v1845_v38 }
 0x3fc   : > { %v3230_v40 = vpop.eup %3229 }
 0x3fd   : > { %v3232_v41 = vpop.eup %3231  ;;  %v1851_v42 = vsel %vm1633_vm3, %v3230_v40, 0.0 }
 0x3fe   : > { %1852 = vadd.xlane.f32.xlu1 %v1851_v42  ;;  %v1848_v44 = vsel %vm1633_vm3, %v3232_v41, 0.0 }
 0x3ff   : > { %1849 = vadd.xlane.f32.xlu0 %v1848_v44 }
 0x483   : > { %v1844_v45 = vpop.xlane.xlu0 %1843 }
 0x484   : > { %3233 = vrcp.f32 %v1844_v45 }
 0x487   : > { %v1847_v46 = vpop.xlane.xlu1 %1846 }
 0x488   : > { %3235 = vrcp.f32 %v1847_v46 }
 0x48b   : > { %v1853_v43 = vpop.xlane.xlu1 %1852 }
 0x48c   : > { %3237 = vrcp.f32 %v1853_v43  ;;  %v1850_v50 = vpop.xlane.xlu0 %1849 }
 0x48d   : > { %3239 = vrcp.f32 %v1850_v50 }
 0x48e   : > { %v3234_v51 = vpop.eup %3233 }
 0x48f   : > { %v1858_v54 = vmul.f32 %v3234_v51, %v3226_v35 }
 0x491   : > { %v1862_v55 = vpack.c.bf16 %v1858_v54, %v1858_v54 }
 0x492   : > { %v3236_v56 = vpop.eup %3235 }
 0x493   : > { %v1859_v59 = vmul.f32 %v3236_v56, %v3228_v37  ;;  %3043 = vmatmul.mubr.msk.bf16.vlgmr.msra.gmra.mrb[36].mxu0 %vm1633_vm3, %v1862_v55 }
 0x494   : > { %3053 = vmatpush3.bf16.msra.mxu0 %v1967_v58  ;;  %3054 = vmatprep.mubr.msk.bf16.mxu0 %vm3344_vm2, %v3343_v10 }
 0x495   : > { %v1863_v60 = vpack.c.bf16 %v1859_v59, %v1859_v59  ;;  %3064 = vmatprep.subr.bf16.mxu0 %v3343_v10 }
 0x496   : > { %v3238_v61 = vpop.eup %3237 }
 0x497   : > { %v3240_v39 = vpop.eup %3239  ;;  %3049 = vmatmul.mubr.msk.bf16.vlgmr.msra.gmra.mrb[28].mxu1 %vm1633_vm3, %v1863_v60  ;;  %v1861_v2 = vmul.f32 %v3238_v61, %v3230_v40 }
 0x498   : > { %v1860_v0 = vmul.f32 %v3240_v39, %v3232_v41  ;;  %3059 = vmatpush3.bf16.msra.mxu1 %v2013_v62  ;;  %3060 = vmatprep.mubr.msk.bf16.mxu1 %vm3344_vm2, %v3343_v10 }
 0x499   : > { %3070 = vmatprep.subr.bf16.mxu1 %v3343_v10  ;;  %v1865_v5 = vpack.c.bf16 %v1861_v2, %v1861_v2  ;;  %v3213_v2 = vld [vmem:[%s3578_s8] sm:$0xff]  }
 0x49a   : > { %v1864_v3 = vpack.c.bf16 %v1860_v0, %v1860_v0 }
 0x49c   : > { %3055 = vmatmul.mubr.msk.bf16.vlgmr.msra.gmra.mrb[40].mxu0 %vm1633_vm3, %v1864_v3  ;;  %v3214_v3 = vld [vmem:[%s3578_s8 + $0x8] sm:$0xff]  }
 0x49d   : > { %3065 = vmatpush3.bf16.msra.mxu0 %v2067_v4  ;;  %3066 = vmatprep.mubr.msk.bf16.mxu0 %vm3344_vm2, %v3343_v10 }
 0x49e   : > { %3076 = vmatprep.subr.bf16.mxu0 %v3343_v10 }
 0x49f   : > { %3061 = vmatmul.mubr.msk.bf16.vlgmr.msra.gmra.mrb[32].mxu1 %vm1633_vm3, %v1865_v5 }
 0x4a0   : > { %3072 = vmatprep.mubr.msk.bf16.mxu1 %vm3344_vm2, %v3343_v10  ;;  %3071 = vmatpush3.bf16.msra.mxu1 %v2113_v7  ;;  %v2822_v7 = vld [vmem:[%s4016_s21] ss:$0 sm:$0xff] }
 0x4a1   : > { %3082 = vmatprep.subr.bf16.mxu1 %v3343_v10 }
 0x566   : > { %v1911_v9 = vpop.f32.mrb[36].mxu0 }
 0x567   : > { %v2055_v11 = vpack.c.bf16 %v1911_v9, %v1911_v9  ;;  %v3044_v12 = vpop.f32.mrb[37].mxu0  ;;  %v2823_v9 = vld [vmem:[%s808_s17] ss:$0 sm:$0xff] }
 0x568   : > { %v1914_v14 = vpop.f32.mrb[38].mxu0 }
 0x569   : > { %v3045_v16 = vpop.f32.mrb[39].mxu0  ;;  %3067 = vmatmul.mubr.msk.bf16.vlgmr.msra.gmra.mrb[44].mxu0 %vm1633_vm3, %v2055_v11  ;;  %v3215_v14 = vld [vmem:[%s3587_s19] sm:$0xff]  }
 0x56a   : > { %v1957_v17 = vpop.f32.mrb[28].mxu1  ;;  %3077 = vmatpush3.bf16.msra.mxu0 %v2159_v13  ;;  %3078 = vmatprep.mubr.msk.bf16.mxu0 %vm3344_vm2, %v3343_v10  ;;  %v3217_v16 = vld [vmem:[%s3587_s19 + $0x10] sm:$0xff]  }
 0x56b   : > { %v2056_v18 = vpack.c.bf16 %v1957_v17, %v1957_v17  ;;  %v3050_v19 = vpop.f32.mrb[29].mxu1  ;;  %3088 = vmatprep.subr.bf16.mxu0 %v3343_v10  ;;  %v3218_v17 = vld [vmem:[%s3587_s19 + $0x18] sm:$0xff]  }
 0x56c   : > { %v1960_v21 = vpop.f32.mrb[30].mxu1  ;;  %v3220_v19 = vld [vmem:[%s3587_s19 + $0x28] sm:$0xff]  }
 0x56d   : > { %v3051_v22 = vpop.f32.mrb[31].mxu1  ;;  %3073 = vmatmul.mubr.msk.bf16.vlgmr.msra.gmra.mrb[36].mxu1 %vm1633_vm3, %v2056_v18  ;;  %v3219_v18 = vld [vmem:[%s3587_s19 + $0x20] sm:$0xff]   ;;  %v3222_v21 = vld [vmem:[%s3587_s19 + $0x38] sm:$0xff]  }
 0x56e   : > { %3083 = vmatpush3.bf16.msra.mxu1 %v2205_v20  ;;  %3084 = vmatprep.mubr.msk.bf16.mxu1 %vm3344_vm2, %v3343_v10  ;;  %v3221_v20 = vld [vmem:[%s3587_s19 + $0x30] sm:$0xff]   ;;  %v2824_v22 = vld [vmem:[%s816_s4] ss:$0 sm:$0xff]  ;;  %s4019_s19 = sld [smem:[#allocation6_spill]] }
 0x56f   : > { %v2003_v23 = vpop.f32.mrb[40].mxu0  ;;  %3096 = vmatprep.subr.bf16.mxu1 %v3343_v10 }
 0x570   : > { %v2057_v24 = vpack.c.bf16 %v2003_v23, %v2003_v23  ;;  %v3056_v25 = vpop.f32.mrb[41].mxu0 }
 0x571   : > { %v2006_v26 = vpop.f32.mrb[42].mxu0 }
 0x572   : > { %v3057_v27 = vpop.f32.mrb[43].mxu0  ;;  %3079 = vmatmul.mubr.msk.bf16.vlgmr.msra.gmra.mrb[48].mxu0 %vm1633_vm3, %v2057_v24  ;;  %v2049_v28 = vpop.f32.mrb[32].mxu1 }
 0x573   : > { %v2058_v29 = vpack.c.bf16 %v2049_v28, %v2049_v28  ;;  %v3062_v30 = vpop.f32.mrb[33].mxu1  ;;  %3092 = vmatprep.mubr.msk.bf16.mxu0 %vm3344_vm2, %v3343_v10  ;;  %3089 = vmatpush3.bf16.msra.mxu0 %v3213_v2 }
 0x574   : > { %v2052_v31 = vpop.f32.mrb[34].mxu1  ;;  %3090 = vmatprep.subr.bf16.mxu0 %v3343_v10 }
 0x575   : > { %v3063_v32 = vpop.f32.mrb[35].mxu1  ;;  %3085 = vmatmul.mubr.msk.bf16.vlgmr.msra.gmra.mrb[40].mxu1 %vm1633_vm3, %v2058_v29 }
 0x576   : > { %3112 = vmatprep.mubr.msk.bf16.mxu1 %vm3344_vm2, %v3343_v10  ;;  %3097 = vmatpush3.bf16.msra.mxu1 %v3215_v14 }
 0x577   : > { %3091 = vmatpush3.bf16.msra.mxu0 %v3214_v3  ;;  %3098 = vmatprep.subr.bf16.mxu1 %v3343_v10 }
 0x57a   : > { %3099 = vmatpush3.bf16.msra.mxu1 %v3216_v15 }
 0x57b   : > { %3100 = vmatprep.subr.bf16.mxu1 %v3343_v10 }
 0x57e   : > { %3101 = vmatpush3.bf16.msra.mxu1 %v3217_v16 }
 0x57f   : > { %3102 = vmatprep.subr.bf16.mxu1 %v3343_v10 }
 0x582   : > { %3103 = vmatpush3.bf16.msra.mxu1 %v3218_v17 }
 0x583   : > { %3104 = vmatprep.subr.bf16.mxu1 %v3343_v10 }
 0x586   : > { %3105 = vmatpush3.bf16.msra.mxu1 %v3219_v18 }
 0x587   : > { %3106 = vmatprep.subr.bf16.mxu1 %v3343_v10 }
 0x58a   : > { %3107 = vmatpush3.bf16.msra.mxu1 %v3220_v19 }
 0x58b   : > { %3108 = vmatprep.subr.bf16.mxu1 %v3343_v10 }
 0x58e   : > { %3109 = vmatpush3.bf16.msra.mxu1 %v3221_v20 }
 0x58f   : > { %3110 = vmatprep.subr.bf16.mxu1 %v3343_v10 }
 0x592   : > { %3111 = vmatpush3.bf16.msra.mxu1 %v3222_v21 }
 0x63c   : > { %v2103_v33 = vpop.f32.mrb[44].mxu0 }
 0x63d   : > { %v3068_v34 = vpop.f32.mrb[45].mxu0  ;;  %v2247_v38 = vsel %vm836_vm1, %v2103_v33, 0.0 }
 0x63e   : > { %v2106_v35 = vpop.f32.mrb[46].mxu0  ;;  %v2829_v34 = vld [vmem:[%s824_s11] ss:$0 sm:$0xff]  ;;  %s4024_s11 = sand.u32 1, %s4019_s19  }
 0x63f   : > { %v3069_v36 = vpop.f32.mrb[47].mxu0  ;;  %s2482_s22 = scalar_lea.sflag [#allocation3], %s4024_s11 }
 0x640   : > { %v2149_v37 = vpop.f32.mrb[36].mxu1 }
 0x641   : > { %v2248_v40 = vsel %vm836_vm1, %v2149_v37, 0.0  ;;  %v3074_v41 = vpop.f32.mrb[37].mxu1 }
 0x642   : > { %v2249_v42 = vadd.f32 %v2248_v40, %v2247_v38  ;;  %v2152_v44 = vpop.f32.mrb[38].mxu1 }
 0x643   : > { %v3075_v45 = vpop.f32.mrb[39].mxu1 }
 0x645   : > { %v2195_v46 = vpop.f32.mrb[48].mxu0 }
 0x646   : > { %v2250_v47 = vsel %vm836_vm1, %v2195_v46, 0.0  ;;  %v3080_v48 = vpop.f32.mrb[49].mxu0 }
 0x647   : > { %v2251_v43 = vadd.f32 %v2250_v47, %v2249_v42  ;;  %v2198_v49 = vpop.f32.mrb[50].mxu0 }
 0x648   : > { %v3081_v50 = vpop.f32.mrb[51].mxu0  ;;  %v2241_v51 = vpop.f32.mrb[40].mxu1 }
 0x649   : > { %v2252_v52 = vsel %vm836_vm1, %v2241_v51, 0.0  ;;  %v3086_v54 = vpop.f32.mrb[41].mxu1 }
 0x64a   : > { %v2253_v55 = vadd.f32 %v2252_v52, %v2251_v43  ;;  %v2244_v56 = vpop.f32.mrb[42].mxu1 }
 0x64b   : > { %v3087_v57 = vpop.f32.mrb[43].mxu1 }
 0x64c   : > { %v2261_v58 = vadd.f32 %v2821_v53, %v2253_v55 }
 0x64e   : > { %v3818_v59 = vadd.f32 %v2261_v58, %v3598_v1 }
 0x650   : > { %v2265_v60 = vsel %vm836_vm1, %v3818_v59, 0.0 }
 0x651   : > { %2266 = vadd.xlane.f32.xlu0 %v2265_v60 }
 0x6de   : > { %v2267_v61 = vpop.xlane.xlu0 %2266 }
 0x6df   : > { %v2268_v39 = vmul.f32 0.03125, %v2267_v61 }
 0x6e1   : > { %v2269_v62 = vsub.f32 %v3818_v59, %v2268_v39 }
 0x6e3   : > { %v2270_v63 = vmul.f32 %v2269_v62, %v2269_v62 }
 0x6e5   : > { %v2271_v0 = vsel %vm836_vm1, %v2270_v63, 0.0 }
 0x6e6   : > { %2272 = vadd.xlane.f32.xlu1 %v2271_v0 }
 0x773   : > { %v2273_v1 = vpop.xlane.xlu1 %2272 }
 0x774   : > { %v2274_v4 = vmul.f32 0.03125, %v2273_v1 }
 0x776   : > { %v2275_v5 = vadd.f32 1e-05, %v2274_v4 }
 0x778   : > { %3241 = vrsqrt.f32 %v2275_v5 }
 0x782   : > { %v3242_v6 = vpop.eup %3241 }
 0x783   : > { %v2277_v8 = vmul.f32 %v3242_v6, %v2269_v62 }
 0x785   : > { %v2284_v11 = vmul.f32 %v2822_v7, %v2277_v8 }
 0x787   : > { %v2291_v12 = vadd.f32 %v2823_v9, %v2284_v11 }
 0x789   : > { %v2292_v13 = vpack.c.bf16 %v2291_v12, %v2291_v12 }
 0x78b   : > { %3093 = vmatmul.mubr.msk.bf16.vlgmr.msra.gmra.mrb[52].mxu0 %vm836_vm1, %v2292_v13 }
 0x85e   : > { %v2353_v23 = vpop.f32.mrb[52].mxu0 }
 0x85f   : > { %v2354_v24 = vadd.f32 %v2824_v22, %v2353_v23  ;;  %v3094_v25 = vpop.f32.mrb[53].mxu0 }
 0x860   : > { %v2356_v26 = vpop.f32.mrb[54].mxu0 }
 0x861   : > { %v2828_v27 = vmul.f32 -1.702, %v2354_v24  ;;  %v3095_v28 = vpop.f32.mrb[55].mxu0 }
 0x863   : > { %v2361_v29 = vmul.f32 1.442695, %v2828_v27 }
 0x865   : > { %3243 = vpow2.f32 %v2361_v29 }
 0x86f   : > { %v3244_v30 = vpop.eup %3243 }
 0x870   : > { %v2363_v10 = vadd.f32 1.0, %v3244_v30 }
 0x872   : > { %3245 = vrcp.f32 %v2363_v10 }
 0x87c   : > { %v3246_v31 = vpop.eup %3245 }
 0x87d   : > { %v2366_v32 = vmul.f32 %v3246_v31, %v2354_v24 }
 0x87f   : > { %v2367_v33 = vpack.c.bf16 %v2366_v32, %v2366_v32 }
 0x881   : > { %3113 = vmatmul.mubr.bf16.vlgmr.msra.gmra.mrb[44].mxu1 %v2367_v33 }
 0x954   : > { %v2473_v35 = vpop.f32.mrb[44].mxu1 }
 0x955   : > { %v2474_v36 = vadd.f32 %v2829_v34, %v2473_v35  ;;  %v3114_v37 = vpop.f32.mrb[45].mxu1 }
 0x956   : > { %v2476_v38 = vpop.f32.mrb[46].mxu1 }
 0x957   : > { %v2479_v40 = vadd.f32 %v2474_v36, %v3818_v59  ;;  %v3115_v41 = vpop.f32.mrb[47].mxu1 }
 0x959   : > { %2480 = vst.msk [vmem:[%s3593_s7] sm:$0xff] %vm836_vm1, %v2479_v40 }
 0x95a   : > { %3260 = shalt.err (!%p3257_p8)
}
 0x95b   : > { %s3261_s7 = scalar_lea.hbm %s3869_s28, 128  ;;  %s3265_s6 = scalar_lea.hbm %s4023_s14, 256 }
 0x95c   : > { %p3262_p10 = scmp.ne.s32.totalorder %s3869_s28, %s3261_s7  ;;  %p3266_p13 = scmp.lt.u32.totalorder %s3869_s28, %s4023_s14 }
 0x95d   : > { %p3267_p0 = scmp.lt.u32.totalorder %s3265_s6, %s3261_s7  ;;  %p3269_p2 = scmp.lt.u32.totalorder %s3261_s7, %s3869_s28 }
 0x95e   : > { %p3263_p11 = pnand %p3262_p10, %p3485_p3 }
 0x95f   : > { %p3268_p1 = por %p3267_p0, %p3266_p13 }
 0x960   : > { %p3264_p12 = pneg %p3263_p11 }
 0x961   : > { %p3270_p4 = por %p3269_p2, %p3268_p1 }
 0x963   : > { %p3271_p5 = pnand %p3270_p4, %p3264_p12 }
 0x965   : > { %3274 = shalt.err (!%p3271_p5)
}
 0x966   : > { %3116 = dma.vmem_to_hbm [thread:$0]  (%p3485_p3), %s3871_s20, 128, %s3869_s28, %s2482_s22  }
 0x967 PF: > { %s4025_s17 = sld [smem:[#allocation12_spill]]  ;;  %s4026_s16 = sld [smem:[#allocation5_spill]] }
 0x96d   : > { %p3122_p6 = scmp.ge.s32.totalorder %s4025_s17, 2  ;;  %s2507_s19 = sand.u32 1, %s4026_s16  }
 0x96e   : > { %s2508_s4 = scalar_lea.sflag [#allocation3], %s2507_s19 }
 0x96f   : > { %p3119_p7 = pnand %p3122_p6, %p3495_p9 }
 0x971   : > { %3308 = dma.done.wait (!%p3119_p7), %s2508_s4, 128  }
 0x972   : > { %3310 = vsyncadd (!%p3119_p7), %s2508_s4, 4294967168  ;;  %s30_s30 = sadd.s32 1, %s4025_s17   ;;  %s4028_s24 = sld [smem:[#allocation6_spill]] }
 0x973   : > { %p27_p8 = scmp.ge.s32.totalorder %s30_s30, 6   ;;  %s4029_s25 = sld [smem:[#allocation7_spill]] }
 0x974   : > { %s4030_s26 = sld [smem:[#allocation17_spill]]  ;;  %s4031_s27 = sld [smem:[#allocation10_spill]] }
 0x975   : > { %s4032_s28 = sld [smem:[#allocation11_spill]]  ;;  %s4033_s29 = sld [smem:[#allocation13_spill]] }
 0x976   : > { %s4034_s0 = sld [smem:[#allocation15_spill]]  ;;  %29 = sbr.rel (!%p27_p8) target bundleno = 20 (0x14), region = 175 }
 0x97d   :  { %2513 = vsyncpa [#allocation3], 1 }
 0x97e   :  { %2515 = vsyncpa [#allocation3 + $0x1], 1 }

</bundles_post_ra>
